<compile_context>
chip_gen: v7x
topology: tpu7x:2x2x1
jax: 0.10.0
libtpu: 0.0.40
codegen_flags: <defaults>
</compile_context>

<pallas_src>
import functools
import math

import jax
import jax.numpy as jnp
from jax.experimental import pallas as pl
from jax.experimental.pallas import tpu as pltpu


# ----------------------------- shared math -----------------------------
def _silu(x):
    return x * jax.nn.sigmoid(x)


def _layernorm(x, w, b, eps=1e-5):
    m = jnp.mean(x, axis=-1, keepdims=True)
    v = jnp.mean((x - m) ** 2, axis=-1, keepdims=True)
    return (x - m) * jax.lax.rsqrt(v + eps) * w + b


def _bf16(x):
    return x.astype(jnp.bfloat16)


def _round_up(x, m):
    return (x + m - 1) // m * m


# ----------------------------- kernels -----------------------------
def edge_kernel(row_ref, col_ref, h_ref, coord_ref,
                nln_w_ref, nln_b_ref,
                we1h_ref, we1c_ref, we1r_ref, be1_ref,
                we2_ref, be2_ref, eln_w_ref, eln_b_ref,
                wc1_ref, bc1_ref, wc2_ref,
                packed_ref):
    n_nodes = h_ref.shape[0]
    t_e = row_ref.shape[0]
    hid = we2_ref.shape[1]
    p_w = packed_ref.shape[1]

    # node-level prep (tiny; recomputed per tile so the E axis has no cross-iteration
    # state and can be megacore-"parallel").  LayerNorm stays f32 on the VPU.
    hn = _layernorm(h_ref[...], nln_w_ref[...], nln_b_ref[...])              # (N, nf)
    # first edge-MLP layer applied per node, gathered afterwards:
    #   onehot(row) @ (hn @ W1h)  ==  (hn @ W1h)[row]
    proj_r = jnp.dot(_bf16(hn), _bf16(we1h_ref[...]), preferred_element_type=jnp.float32)
    proj_c = jnp.dot(_bf16(hn), _bf16(we1c_ref[...]), preferred_element_type=jnp.float32)

    # in-kernel gather via one-hot MXU matmuls (no HBM round trip for h[row]/h[col]).
    # Padded edges carry index == n_nodes -> all-zero one-hot rows -> inert.
    iota_n = jax.lax.broadcasted_iota(jnp.int32, (t_e, n_nodes), 1)
    oh_r = jnp.where(row_ref[...] == iota_n, 1.0, 0.0)                       # (tE, N) f32
    oh_c = jnp.where(col_ref[...] == iota_n, 1.0, 0.0)
    x_lin = (jnp.dot(_bf16(oh_r), _bf16(proj_r), preferred_element_type=jnp.float32)
             + jnp.dot(_bf16(oh_c), _bf16(proj_c), preferred_element_type=jnp.float32))
    # coordinate gather stays f32 (exact: one-hot rows just select values)
    c_r = jnp.dot(oh_r, coord_ref[...], preferred_element_type=jnp.float32)
    c_c = jnp.dot(oh_c, coord_ref[...], preferred_element_type=jnp.float32)
    cdiff = c_r - c_c                                                        # (tE, 3)
    radial = jnp.sum(cdiff * cdiff, axis=-1, keepdims=True)                  # (tE, 1)

    # edge MLP (concat folded into split matmuls); elementwise math f32 on the VPU
    x = _silu(x_lin + radial * we1r_ref[...] + be1_ref[...])
    x = _silu(jnp.dot(_bf16(x), _bf16(we2_ref[...]), preferred_element_type=jnp.float32)
              + be2_ref[...])
    ef = _layernorm(x, eln_w_ref[...], eln_b_ref[...])                       # (tE, H)

    # coord_mlp: Linear(H,H)+SiLU on the MXU; final Linear(H,1,no bias) as a VPU
    # multiply + lane reduce (avoids a 1-wide MXU pass).
    c1 = _silu(jnp.dot(_bf16(ef), _bf16(wc1_ref[...]), preferred_element_type=jnp.float32)
               + bc1_ref[...])
    s = jnp.sum(c1 * wc2_ref[...], axis=-1, keepdims=True)                   # (tE, 1)
    trans = cdiff * s                                                        # (tE, 3)

    # lane-dense packed bf16 slab: [edge_feat | trans | ones | 0-pad] -> (tE, p_w)
    packed_ref[:, :hid] = _bf16(ef)
    packed_ref[:, hid:hid + 3] = _bf16(trans)
    packed_ref[:, hid + 3:hid + 4] = jnp.ones((t_e, 1), jnp.bfloat16)
    packed_ref[:, hid + 4:] = jnp.zeros((t_e, p_w - hid - 4), jnp.bfloat16)


def node_kernel(row_ref, packed_ref, h_ref, coord_ref,
                nln_w_ref, nln_b_ref,
                wn1h_ref, wn1a_ref, bn1_ref, wn2_ref, bn2_ref,
                hout_ref, cout_ref, agg_ref):
    i = pl.program_id(0)
    n_nodes = h_ref.shape[0]
    t_e = row_ref.shape[0]
    hid = wn1a_ref.shape[0]

    @pl.when(i == 0)
    def _():
        agg_ref[...] = jnp.zeros_like(agg_ref)

    # segment-sum contribution of this edge tile in ONE matmul:
    #   onehot(row)^T @ [edge_feat | trans | 1]  ->  [agg_e | agg_t | counts]
    iota_n = jax.lax.broadcasted_iota(jnp.int32, (t_e, n_nodes), 1)
    oh = _bf16(jnp.where(row_ref[...] == iota_n, 1.0, 0.0))                  # (tE, N)
    agg_ref[...] += jax.lax.dot_general(
        oh, packed_ref[...], (((0,), (0,)), ((), ())),
        preferred_element_type=jnp.float32)                                  # (N, p_w)

    @pl.when(i == pl.num_programs(0) - 1)
    def _():
        agg = agg_ref[...]
        agg_e = agg[:, :hid]                        # unsorted_segment_sum(edge_feat, row)
        agg_t = agg[:, hid:hid + 3]                 # sum of trans per node
        counts = agg[:, hid + 3:hid + 4]            # edges per node (exact in bf16)
        # coords_agg='mean' with clamp(min=1)
        cout_ref[...] = coord_ref[...] + agg_t / jnp.maximum(counts, 1.0)

        hn = _layernorm(h_ref[...], nln_w_ref[...], nln_b_ref[...])
        x = _silu(jnp.dot(_bf16(hn), _bf16(wn1h_ref[...]),
                          preferred_element_type=jnp.float32)
                  + jnp.dot(_bf16(agg_e), _bf16(wn1a_ref[...]),
                            preferred_element_type=jnp.float32)
                  + bn1_ref[...])
        out = jnp.dot(_bf16(x), _bf16(wn2_ref[...]),
                      preferred_element_type=jnp.float32) + bn2_ref[...]
        hout_ref[...] = h_ref[...] + out            # residual uses pre-LN h0


# ----------------------------- wrapper -----------------------------
def e_gcl_forward(params, h, row, col, coord, *,
                  block_e=512, vmem_limit=32 * 1024 * 1024):
    n, nf = h.shape
    e = row.shape[0]
    hid = params["we2"].shape[1]
    out_nf = params["wn2"].shape[1]
    p_w = _round_up(hid + 4, 128)              # lane-dense packed width

    assert block_e % 8 == 0
    t_e = min(block_e, _round_up(e, 8))
    e_pad = _round_up(e, t_e)
    pad = e_pad - e
    # padded edges point at the (nonexistent) node `n` -> inert in both kernels
    row_p = jnp.pad(row.astype(jnp.int32), (0, pad), constant_values=n).reshape(e_pad, 1)
    col_p = jnp.pad(col.astype(jnp.int32), (0, pad), constant_values=n).reshape(e_pad, 1)

    grid = (e_pad // t_e,)
    edge_spec = lambda w: pl.BlockSpec((t_e, w), lambda i: (i, 0))
    full = lambda arr: pl.BlockSpec(arr.shape, lambda i: (0, 0))

    weights_e = (params["node_ln_w"], params["node_ln_b"],
                 params["we1h"], params["we1c"], params["we1r"], params["be1"],
                 params["we2"], params["be2"],
                 params["edge_ln_w"], params["edge_ln_b"],
                 params["wc1"], params["bc1"], params["wc2"])

    packed = pl.pallas_call(
        edge_kernel,
        out_shape=jax.ShapeDtypeStruct((e_pad, p_w), jnp.bfloat16),
        grid=grid,
        in_specs=[edge_spec(1), edge_spec(1), full(h), full(coord)]
                 + [full(w) for w in weights_e],
        out_specs=edge_spec(p_w),
        compiler_params=pltpu.CompilerParams(
            dimension_semantics=("parallel",),
            vmem_limit_bytes=vmem_limit),
    )(row_p, col_p, h, coord, *weights_e)

    weights_n = (params["node_ln_w"], params["node_ln_b"],
                 params["wn1h"], params["wn1a"], params["bn1"],
                 params["wn2"], params["bn2"])

    h_out, coord_out = pl.pallas_call(
        node_kernel,
        out_shape=(jax.ShapeDtypeStruct((n, out_nf), jnp.float32),
                   jax.ShapeDtypeStruct((n, 3), jnp.float32)),
        grid=grid,
        in_specs=[edge_spec(1), edge_spec(p_w), full(h), full(coord)]
                 + [full(w) for w in weights_n],
        out_specs=(pl.BlockSpec((n, out_nf), lambda i: (0, 0)),
                   pl.BlockSpec((n, 3), lambda i: (0, 0))),
        scratch_shapes=[pltpu.VMEM((n, p_w), jnp.float32)],
        compiler_params=pltpu.CompilerParams(
            dimension_semantics=("arbitrary",),          # E is the reduction axis here
            vmem_limit_bytes=vmem_limit),
    )(row_p, packed, h, coord, *weights_n)

    return h_out, coord_out


# ----------------------------- parameter init -----------------------------
def init_params(key, nf, hidden_nf, out_nf):
    ks = jax.random.split(key, 8)

    def lin(k, fan_in, fan_out):
        bound = 1.0 / math.sqrt(fan_in)
        kw, kb = jax.random.split(k)
        w = jax.random.uniform(kw, (fan_in, fan_out), jnp.float32, -bound, bound)
        b = jax.random.uniform(kb, (1, fan_out), jnp.float32, -bound, bound)
        return w, b

    p = {}
    # edge_mlp: Linear(2*nf + 1, H) split into [h_row | h_col | radial] pieces
    we1, be1 = lin(ks[0], 2 * nf + 1, hidden_nf)
    p["we1h"], p["we1c"], p["we1r"], p["be1"] = (
        we1[:nf], we1[nf:2 * nf], we1[2 * nf:2 * nf + 1], be1)
    p["we2"], p["be2"] = lin(ks[1], hidden_nf, hidden_nf)
    # node_mlp: Linear(nf + H, H) split into [h_norm | agg] pieces, then Linear(H, out_nf)
    wn1, bn1 = lin(ks[2], hidden_nf + nf, hidden_nf)
    p["wn1h"], p["wn1a"], p["bn1"] = wn1[:nf], wn1[nf:], bn1
    p["wn2"], p["bn2"] = lin(ks[3], hidden_nf, out_nf)
    # coord_mlp: Linear(H, H) -> SiLU -> Linear(H, 1, bias=False, xavier_uniform gain=0.001)
    p["wc1"], p["bc1"] = lin(ks[4], hidden_nf, hidden_nf)
    xb = 0.001 * math.sqrt(6.0 / (hidden_nf + 1))
    p["wc2"] = jax.random.uniform(ks[5], (1, hidden_nf), jnp.float32, -xb, xb)  # row form
    # LayerNorm affine params
    p["node_ln_w"] = jnp.ones((1, nf), jnp.float32)
    p["node_ln_b"] = jnp.zeros((1, nf), jnp.float32)
    p["edge_ln_w"] = jnp.ones((1, hidden_nf), jnp.float32)
    p["edge_ln_b"] = jnp.zeros((1, hidden_nf), jnp.float32)
    return p


# ----------------------------- pure-JAX reference -----------------------------
def reference_forward(params, h, row, col, coord):
    n = h.shape[0]
    h0 = h
    hn = _layernorm(h, params["node_ln_w"], params["node_ln_b"])
    cd = coord[row] - coord[col]
    radial = jnp.sum(cd ** 2, axis=1, keepdims=True)
    x = (hn[row] @ params["we1h"] + hn[col] @ params["we1c"]
         + radial * params["we1r"] + params["be1"])
    x = _silu(x)
    x = _silu(x @ params["we2"] + params["be2"])
    ef = _layernorm(x, params["edge_ln_w"], params["edge_ln_b"])
    c1 = _silu(ef @ params["wc1"] + params["bc1"])
    s = jnp.sum(c1 * params["wc2"], axis=-1, keepdims=True)
    trans = cd * s
    e = row.shape[0]
    agg_t = jnp.zeros((n, 3), jnp.float32).at[row].add(trans)
    cnt = jnp.zeros((n, 1), jnp.float32).at[row].add(jnp.ones((e, 1), jnp.float32))
    coord_out = coord + agg_t / jnp.maximum(cnt, 1.0)
    agg_e = jnp.zeros((n, ef.shape[1]), jnp.float32).at[row].add(ef)
    y = _silu(hn @ params["wn1h"] + agg_e @ params["wn1a"] + params["bn1"])
    h_out = h0 + (y @ params["wn2"] + params["bn2"])
    return h_out, coord_out


# ----------------------------- main -----------------------------
if __name__ == "__main__":
    n_nodes, nf, hidden_nf, out_nf = 8, 32, 32, 32   # input_nf == output_nf == hidden_nf
    key = jax.random.PRNGKey(0)
    k_h, k_c, k_p = jax.random.split(key, 3)

    h = jax.random.normal(k_h, (n_nodes, nf), jnp.float32)
    coord = jax.random.normal(k_c, (n_nodes, 3), jnp.float32)
    # fully-connected graph without self-loops: E = N*(N-1) = 56
    rr, cc = jnp.meshgrid(jnp.arange(n_nodes), jnp.arange(n_nodes), indexing="ij")
    mask = rr != cc
    row = rr[mask].astype(jnp.int32)
    col = cc[mask].astype(jnp.int32)

    params = init_params(k_p, nf, hidden_nf, out_nf)

    # block_e=16 -> E padded to 64, 4-step edge grid: exercises the multi-tile
    # (pipelined, megacore-parallel) path even at toy sizes.
    fwd = jax.jit(functools.partial(e_gcl_forward, block_e=16))
    h_out, coord_out = fwd(params, h, row, col, coord)
    jax.block_until_ready((h_out, coord_out))

    h_ref, c_ref = reference_forward(params, h, row, col, coord)
    # bf16 MXU operands (f32 accumulation / f32 VPU math) vs. a pure-f32 reference.
    assert jnp.allclose(h_out, h_ref, atol=5e-2, rtol=5e-2), \
        float(jnp.max(jnp.abs(h_out - h_ref)))
    assert jnp.allclose(coord_out, c_ref, atol=1e-3, rtol=1e-3), \
        float(jnp.max(jnp.abs(coord_out - c_ref)))

    print("KERNEL_OK")
</pallas_src>

<mosaic_0001>
module attributes {stable_mosaic.version = 11 : i64} {
  func.func @edge_kernel(%arg0: i32, %arg1: memref<16x1xi32, #tpu.memory_space<vmem>>, %arg2: memref<16x1xi32, #tpu.memory_space<vmem>>, %arg3: memref<8x32xf32, #tpu.memory_space<vmem>>, %arg4: memref<8x3xf32, #tpu.memory_space<vmem>>, %arg5: memref<1x32xf32, #tpu.memory_space<vmem>>, %arg6: memref<1x32xf32, #tpu.memory_space<vmem>>, %arg7: memref<32x32xf32, #tpu.memory_space<vmem>>, %arg8: memref<32x32xf32, #tpu.memory_space<vmem>>, %arg9: memref<1x32xf32, #tpu.memory_space<vmem>>, %arg10: memref<1x32xf32, #tpu.memory_space<vmem>>, %arg11: memref<32x32xf32, #tpu.memory_space<vmem>>, %arg12: memref<1x32xf32, #tpu.memory_space<vmem>>, %arg13: memref<1x32xf32, #tpu.memory_space<vmem>>, %arg14: memref<1x32xf32, #tpu.memory_space<vmem>>, %arg15: memref<32x32xf32, #tpu.memory_space<vmem>>, %arg16: memref<1x32xf32, #tpu.memory_space<vmem>>, %arg17: memref<1x32xf32, #tpu.memory_space<vmem>>, %arg18: memref<16x128xbf16, #tpu.memory_space<vmem>>) attributes {dimension_semantics = [#tpu.dimension_semantics<parallel>], iteration_bounds = array<i64: 4>, scalar_prefetch = 0 : i64, scratch_operands = 0 : i64, tpu.core_type = #tpu.core_type<tc>, window_params = [{transform_indices = @transform_0, window_bounds = array<i64: 16, 1>}, {transform_indices = @transform_1, window_bounds = array<i64: 16, 1>}, {pipeline_mode = #tpu.pipeline_mode<synchronous>, transform_indices = @transform_2, window_bounds = array<i64: 8, 32>}, {pipeline_mode = #tpu.pipeline_mode<synchronous>, transform_indices = @transform_3, window_bounds = array<i64: 8, 3>}, {pipeline_mode = #tpu.pipeline_mode<synchronous>, transform_indices = @transform_4, window_bounds = array<i64: 1, 32>}, {pipeline_mode = #tpu.pipeline_mode<synchronous>, transform_indices = @transform_5, window_bounds = array<i64: 1, 32>}, {pipeline_mode = #tpu.pipeline_mode<synchronous>, transform_indices = @transform_6, window_bounds = array<i64: 32, 32>}, {pipeline_mode = #tpu.pipeline_mode<synchronous>, transform_indices = @transform_7, window_bounds = array<i64: 32, 32>}, {pipeline_mode = #tpu.pipeline_mode<synchronous>, transform_indices = @transform_8, window_bounds = array<i64: 1, 32>}, {pipeline_mode = #tpu.pipeline_mode<synchronous>, transform_indices = @transform_9, window_bounds = array<i64: 1, 32>}, {pipeline_mode = #tpu.pipeline_mode<synchronous>, transform_indices = @transform_10, window_bounds = array<i64: 32, 32>}, {pipeline_mode = #tpu.pipeline_mode<synchronous>, transform_indices = @transform_11, window_bounds = array<i64: 1, 32>}, {pipeline_mode = #tpu.pipeline_mode<synchronous>, transform_indices = @transform_12, window_bounds = array<i64: 1, 32>}, {pipeline_mode = #tpu.pipeline_mode<synchronous>, transform_indices = @transform_13, window_bounds = array<i64: 1, 32>}, {pipeline_mode = #tpu.pipeline_mode<synchronous>, transform_indices = @transform_14, window_bounds = array<i64: 32, 32>}, {pipeline_mode = #tpu.pipeline_mode<synchronous>, transform_indices = @transform_15, window_bounds = array<i64: 1, 32>}, {pipeline_mode = #tpu.pipeline_mode<synchronous>, transform_indices = @transform_16, window_bounds = array<i64: 1, 32>}, {transform_indices = @transform_17, window_bounds = array<i64: 16, 128>}]} {
    %c0 = arith.constant 0 : index
    %c0_0 = arith.constant 0 : index
    %0 = vector.load %arg3[%c0, %c0_0] : memref<8x32xf32, #tpu.memory_space<vmem>>, vector<8x32xf32>
    %c0_1 = arith.constant 0 : index
    %c0_2 = arith.constant 0 : index
    %1 = vector.load %arg5[%c0_1, %c0_2] : memref<1x32xf32, #tpu.memory_space<vmem>>, vector<1x32xf32>
    %c0_3 = arith.constant 0 : index
    %c0_4 = arith.constant 0 : index
    %2 = vector.load %arg6[%c0_3, %c0_4] : memref<1x32xf32, #tpu.memory_space<vmem>>, vector<1x32xf32>
    %cst = arith.constant dense<0.000000e+00> : vector<8xf32>
    %3 = vector.multi_reduction <add>, %0, %cst [1] : vector<8x32xf32> to vector<8xf32>
    %4 = vector.shape_cast %3 : vector<8xf32> to vector<8x1xf32>
    %cst_5 = arith.constant 3.200000e+01 : f32
    %5 = vector.broadcast %cst_5 : f32 to vector<8x1xf32>
    %6 = arith.divf %4, %5 : vector<8x1xf32>
    %7 = vector.broadcast %6 : vector<8x1xf32> to vector<8x32xf32>
    %8 = arith.subf %0, %7 : vector<8x32xf32>
    %9 = arith.mulf %8, %8 : vector<8x32xf32>
    %cst_6 = arith.constant dense<0.000000e+00> : vector<8xf32>
    %10 = vector.multi_reduction <add>, %9, %cst_6 [1] : vector<8x32xf32> to vector<8xf32>
    %11 = vector.shape_cast %10 : vector<8xf32> to vector<8x1xf32>
    %cst_7 = arith.constant 3.200000e+01 : f32
    %12 = vector.broadcast %cst_7 : f32 to vector<8x1xf32>
    %13 = arith.divf %11, %12 : vector<8x1xf32>
    %14 = vector.broadcast %6 : vector<8x1xf32> to vector<8x32xf32>
    %15 = arith.subf %0, %14 : vector<8x32xf32>
    %cst_8 = arith.constant 9.99999974E-6 : f32
    %16 = vector.broadcast %cst_8 : f32 to vector<8x1xf32>
    %17 = arith.addf %13, %16 : vector<8x1xf32>
    %18 = math.rsqrt %17 : vector<8x1xf32>
    %19 = vector.broadcast %18 : vector<8x1xf32> to vector<8x32xf32>
    %20 = arith.mulf %15, %19 : vector<8x32xf32>
    %21 = vector.broadcast %1 : vector<1x32xf32> to vector<8x32xf32>
    %22 = arith.mulf %20, %21 : vector<8x32xf32>
    %23 = vector.broadcast %2 : vector<1x32xf32> to vector<8x32xf32>
    %24 = arith.addf %22, %23 : vector<8x32xf32>
    %25 = arith.truncf %24 : vector<8x32xf32> to vector<8x32xbf16>
    %c0_9 = arith.constant 0 : index
    %c0_10 = arith.constant 0 : index
    %26 = vector.load %arg7[%c0_9, %c0_10] : memref<32x32xf32, #tpu.memory_space<vmem>>, vector<32x32xf32>
    %27 = arith.truncf %26 : vector<32x32xf32> to vector<32x32xbf16>
    %cst_11 = arith.constant dense<0.000000e+00> : vector<8x32xf32>
    %28 = tpu.matmul %25, %27, %cst_11 {dimension_numbers = #tpu.dot_dimension_numbers<[1], [0], [0], [1], [0, 0, 1, 1], [], []>} : vector<8x32xbf16>, vector<32x32xbf16>, vector<8x32xf32> -> vector<8x32xf32>
    %29 = arith.truncf %24 : vector<8x32xf32> to vector<8x32xbf16>
    %c0_12 = arith.constant 0 : index
    %c0_13 = arith.constant 0 : index
    %30 = vector.load %arg8[%c0_12, %c0_13] : memref<32x32xf32, #tpu.memory_space<vmem>>, vector<32x32xf32>
    %31 = arith.truncf %30 : vector<32x32xf32> to vector<32x32xbf16>
    %cst_14 = arith.constant dense<0.000000e+00> : vector<8x32xf32>
    %32 = tpu.matmul %29, %31, %cst_14 {dimension_numbers = #tpu.dot_dimension_numbers<[1], [0], [0], [1], [0, 0, 1, 1], [], []>} : vector<8x32xbf16>, vector<32x32xbf16>, vector<8x32xf32> -> vector<8x32xf32>
    %33 = tpu.iota {dimensions = array<i32: 1>} : vector<16x8xi32>
    %c0_15 = arith.constant 0 : index
    %c0_16 = arith.constant 0 : index
    %34 = vector.load %arg1[%c0_15, %c0_16] : memref<16x1xi32, #tpu.memory_space<vmem>>, vector<16x1xi32>
    %35 = vector.broadcast %34 : vector<16x1xi32> to vector<16x8xi32>
    %36 = arith.cmpi eq, %35, %33 : vector<16x8xi32>
    %cst_17 = arith.constant 1.000000e+00 : f32
    %cst_18 = arith.constant 0.000000e+00 : f32
    %37 = vector.broadcast %cst_17 : f32 to vector<16x8xf32>
    %38 = vector.broadcast %cst_18 : f32 to vector<16x8xf32>
    %39 = arith.select %36, %37, %38 : vector<16x8xi1>, vector<16x8xf32>
    %c0_19 = arith.constant 0 : index
    %c0_20 = arith.constant 0 : index
    %40 = vector.load %arg2[%c0_19, %c0_20] : memref<16x1xi32, #tpu.memory_space<vmem>>, vector<16x1xi32>
    %41 = vector.broadcast %40 : vector<16x1xi32> to vector<16x8xi32>
    %42 = arith.cmpi eq, %41, %33 : vector<16x8xi32>
    %cst_21 = arith.constant 1.000000e+00 : f32
    %cst_22 = arith.constant 0.000000e+00 : f32
    %43 = vector.broadcast %cst_21 : f32 to vector<16x8xf32>
    %44 = vector.broadcast %cst_22 : f32 to vector<16x8xf32>
    %45 = arith.select %42, %43, %44 : vector<16x8xi1>, vector<16x8xf32>
    %46 = arith.truncf %39 : vector<16x8xf32> to vector<16x8xbf16>
    %47 = arith.truncf %28 : vector<8x32xf32> to vector<8x32xbf16>
    %cst_23 = arith.constant dense<0.000000e+00> : vector<16x32xf32>
    %48 = tpu.matmul %46, %47, %cst_23 {dimension_numbers = #tpu.dot_dimension_numbers<[1], [0], [0], [1], [0, 0, 1, 1], [], []>} : vector<16x8xbf16>, vector<8x32xbf16>, vector<16x32xf32> -> vector<16x32xf32>
    %49 = arith.truncf %45 : vector<16x8xf32> to vector<16x8xbf16>
    %50 = arith.truncf %32 : vector<8x32xf32> to vector<8x32xbf16>
    %cst_24 = arith.constant dense<0.000000e+00> : vector<16x32xf32>
    %51 = tpu.matmul %49, %50, %cst_24 {dimension_numbers = #tpu.dot_dimension_numbers<[1], [0], [0], [1], [0, 0, 1, 1], [], []>} : vector<16x8xbf16>, vector<8x32xbf16>, vector<16x32xf32> -> vector<16x32xf32>
    %52 = arith.addf %48, %51 : vector<16x32xf32>
    %c0_25 = arith.constant 0 : index
    %c0_26 = arith.constant 0 : index
    %53 = vector.load %arg4[%c0_25, %c0_26] : memref<8x3xf32, #tpu.memory_space<vmem>>, vector<8x3xf32>
    %cst_27 = arith.constant dense<0.000000e+00> : vector<16x3xf32>
    %54 = tpu.matmul %39, %53, %cst_27 {dimension_numbers = #tpu.dot_dimension_numbers<[1], [0], [0], [1], [0, 0, 1, 1], [], []>} : vector<16x8xf32>, vector<8x3xf32>, vector<16x3xf32> -> vector<16x3xf32>
    %c0_28 = arith.constant 0 : index
    %c0_29 = arith.constant 0 : index
    %55 = vector.load %arg4[%c0_28, %c0_29] : memref<8x3xf32, #tpu.memory_space<vmem>>, vector<8x3xf32>
    %cst_30 = arith.constant dense<0.000000e+00> : vector<16x3xf32>
    %56 = tpu.matmul %45, %55, %cst_30 {dimension_numbers = #tpu.dot_dimension_numbers<[1], [0], [0], [1], [0, 0, 1, 1], [], []>} : vector<16x8xf32>, vector<8x3xf32>, vector<16x3xf32> -> vector<16x3xf32>
    %57 = arith.subf %54, %56 : vector<16x3xf32>
    %58 = arith.mulf %57, %57 : vector<16x3xf32>
    %cst_31 = arith.constant dense<0.000000e+00> : vector<16xf32>
    %59 = vector.multi_reduction <add>, %58, %cst_31 [1] : vector<16x3xf32> to vector<16xf32>
    %60 = vector.shape_cast %59 : vector<16xf32> to vector<16x1xf32>
    %c0_32 = arith.constant 0 : index
    %c0_33 = arith.constant 0 : index
    %61 = vector.load %arg9[%c0_32, %c0_33] : memref<1x32xf32, #tpu.memory_space<vmem>>, vector<1x32xf32>
    %62 = vector.broadcast %60 : vector<16x1xf32> to vector<16x32xf32>
    %63 = vector.broadcast %61 : vector<1x32xf32> to vector<16x32xf32>
    %64 = arith.mulf %62, %63 : vector<16x32xf32>
    %65 = arith.addf %52, %64 : vector<16x32xf32>
    %c0_34 = arith.constant 0 : index
    %c0_35 = arith.constant 0 : index
    %66 = vector.load %arg10[%c0_34, %c0_35] : memref<1x32xf32, #tpu.memory_space<vmem>>, vector<1x32xf32>
    %67 = vector.broadcast %66 : vector<1x32xf32> to vector<16x32xf32>
    %68 = arith.addf %65, %67 : vector<16x32xf32>
    %69 = arith.negf %68 : vector<16x32xf32>
    %70 = math.exp %69 : vector<16x32xf32>
    %cst_36 = arith.constant 1.000000e+00 : f32
    %71 = vector.broadcast %cst_36 : f32 to vector<16x32xf32>
    %72 = arith.addf %71, %70 : vector<16x32xf32>
    %73 = arith.divf %71, %72 : vector<16x32xf32>
    %74 = arith.mulf %68, %73 : vector<16x32xf32>
    %75 = arith.truncf %74 : vector<16x32xf32> to vector<16x32xbf16>
    %c0_37 = arith.constant 0 : index
    %c0_38 = arith.constant 0 : index
    %76 = vector.load %arg11[%c0_37, %c0_38] : memref<32x32xf32, #tpu.memory_space<vmem>>, vector<32x32xf32>
    %77 = arith.truncf %76 : vector<32x32xf32> to vector<32x32xbf16>
    %cst_39 = arith.constant dense<0.000000e+00> : vector<16x32xf32>
    %78 = tpu.matmul %75, %77, %cst_39 {dimension_numbers = #tpu.dot_dimension_numbers<[1], [0], [0], [1], [0, 0, 1, 1], [], []>} : vector<16x32xbf16>, vector<32x32xbf16>, vector<16x32xf32> -> vector<16x32xf32>
    %c0_40 = arith.constant 0 : index
    %c0_41 = arith.constant 0 : index
    %79 = vector.load %arg12[%c0_40, %c0_41] : memref<1x32xf32, #tpu.memory_space<vmem>>, vector<1x32xf32>
    %80 = vector.broadcast %79 : vector<1x32xf32> to vector<16x32xf32>
    %81 = arith.addf %78, %80 : vector<16x32xf32>
    %82 = arith.negf %81 : vector<16x32xf32>
    %83 = math.exp %82 : vector<16x32xf32>
    %cst_42 = arith.constant 1.000000e+00 : f32
    %84 = vector.broadcast %cst_42 : f32 to vector<16x32xf32>
    %85 = arith.addf %84, %83 : vector<16x32xf32>
    %86 = arith.divf %84, %85 : vector<16x32xf32>
    %87 = arith.mulf %81, %86 : vector<16x32xf32>
    %c0_43 = arith.constant 0 : index
    %c0_44 = arith.constant 0 : index
    %88 = vector.load %arg13[%c0_43, %c0_44] : memref<1x32xf32, #tpu.memory_space<vmem>>, vector<1x32xf32>
    %c0_45 = arith.constant 0 : index
    %c0_46 = arith.constant 0 : index
    %89 = vector.load %arg14[%c0_45, %c0_46] : memref<1x32xf32, #tpu.memory_space<vmem>>, vector<1x32xf32>
    %cst_47 = arith.constant dense<0.000000e+00> : vector<16xf32>
    %90 = vector.multi_reduction <add>, %87, %cst_47 [1] : vector<16x32xf32> to vector<16xf32>
    %91 = vector.shape_cast %90 : vector<16xf32> to vector<16x1xf32>
    %cst_48 = arith.constant 3.200000e+01 : f32
    %92 = vector.broadcast %cst_48 : f32 to vector<16x1xf32>
    %93 = arith.divf %91, %92 : vector<16x1xf32>
    %94 = vector.broadcast %93 : vector<16x1xf32> to vector<16x32xf32>
    %95 = arith.subf %87, %94 : vector<16x32xf32>
    %96 = arith.mulf %95, %95 : vector<16x32xf32>
    %cst_49 = arith.constant dense<0.000000e+00> : vector<16xf32>
    %97 = vector.multi_reduction <add>, %96, %cst_49 [1] : vector<16x32xf32> to vector<16xf32>
    %98 = vector.shape_cast %97 : vector<16xf32> to vector<16x1xf32>
    %cst_50 = arith.constant 3.200000e+01 : f32
    %99 = vector.broadcast %cst_50 : f32 to vector<16x1xf32>
    %100 = arith.divf %98, %99 : vector<16x1xf32>
    %101 = vector.broadcast %93 : vector<16x1xf32> to vector<16x32xf32>
    %102 = arith.subf %87, %101 : vector<16x32xf32>
    %cst_51 = arith.constant 9.99999974E-6 : f32
    %103 = vector.broadcast %cst_51 : f32 to vector<16x1xf32>
    %104 = arith.addf %100, %103 : vector<16x1xf32>
    %105 = math.rsqrt %104 : vector<16x1xf32>
    %106 = vector.broadcast %105 : vector<16x1xf32> to vector<16x32xf32>
    %107 = arith.mulf %102, %106 : vector<16x32xf32>
    %108 = vector.broadcast %88 : vector<1x32xf32> to vector<16x32xf32>
    %109 = arith.mulf %107, %108 : vector<16x32xf32>
    %110 = vector.broadcast %89 : vector<1x32xf32> to vector<16x32xf32>
    %111 = arith.addf %109, %110 : vector<16x32xf32>
    %112 = arith.truncf %111 : vector<16x32xf32> to vector<16x32xbf16>
    %c0_52 = arith.constant 0 : index
    %c0_53 = arith.constant 0 : index
    %113 = vector.load %arg15[%c0_52, %c0_53] : memref<32x32xf32, #tpu.memory_space<vmem>>, vector<32x32xf32>
    %114 = arith.truncf %113 : vector<32x32xf32> to vector<32x32xbf16>
    %cst_54 = arith.constant dense<0.000000e+00> : vector<16x32xf32>
    %115 = tpu.matmul %112, %114, %cst_54 {dimension_numbers = #tpu.dot_dimension_numbers<[1], [0], [0], [1], [0, 0, 1, 1], [], []>} : vector<16x32xbf16>, vector<32x32xbf16>, vector<16x32xf32> -> vector<16x32xf32>
    %c0_55 = arith.constant 0 : index
    %c0_56 = arith.constant 0 : index
    %116 = vector.load %arg16[%c0_55, %c0_56] : memref<1x32xf32, #tpu.memory_space<vmem>>, vector<1x32xf32>
    %117 = vector.broadcast %116 : vector<1x32xf32> to vector<16x32xf32>
    %118 = arith.addf %115, %117 : vector<16x32xf32>
    %119 = arith.negf %118 : vector<16x32xf32>
    %120 = math.exp %119 : vector<16x32xf32>
    %cst_57 = arith.constant 1.000000e+00 : f32
    %121 = vector.broadcast %cst_57 : f32 to vector<16x32xf32>
    %122 = arith.addf %121, %120 : vector<16x32xf32>
    %123 = arith.divf %121, %122 : vector<16x32xf32>
    %124 = arith.mulf %118, %123 : vector<16x32xf32>
    %c0_58 = arith.constant 0 : index
    %c0_59 = arith.constant 0 : index
    %125 = vector.load %arg17[%c0_58, %c0_59] : memref<1x32xf32, #tpu.memory_space<vmem>>, vector<1x32xf32>
    %126 = vector.broadcast %125 : vector<1x32xf32> to vector<16x32xf32>
    %127 = arith.mulf %124, %126 : vector<16x32xf32>
    %cst_60 = arith.constant dense<0.000000e+00> : vector<16xf32>
    %128 = vector.multi_reduction <add>, %127, %cst_60 [1] : vector<16x32xf32> to vector<16xf32>
    %129 = vector.shape_cast %128 : vector<16xf32> to vector<16x1xf32>
    %130 = vector.broadcast %129 : vector<16x1xf32> to vector<16x3xf32>
    %131 = arith.mulf %57, %130 : vector<16x3xf32>
    %132 = arith.truncf %111 : vector<16x32xf32> to vector<16x32xbf16>
    %c0_61 = arith.constant 0 : index
    %c0_62 = arith.constant 0 : index
    %133 = vector.load %arg18[%c0_61, %c0_62] : memref<16x128xbf16, #tpu.memory_space<vmem>>, vector<16x32xbf16>
    tpu.vector_store %arg18[%c0_61, %c0_62], %132 {strides = array<i32>} : memref<16x128xbf16, #tpu.memory_space<vmem>>, vector<16x32xbf16>,
    %134 = arith.truncf %131 : vector<16x3xf32> to vector<16x3xbf16>
    %c0_63 = arith.constant 0 : index
    %c32 = arith.constant 32 : index
    %135 = vector.load %arg18[%c0_63, %c32] : memref<16x128xbf16, #tpu.memory_space<vmem>>, vector<16x3xbf16>
    tpu.vector_store %arg18[%c0_63, %c32], %134 {strides = array<i32>} : memref<16x128xbf16, #tpu.memory_space<vmem>>, vector<16x3xbf16>,
    %cst_64 = arith.constant 1.000000e+00 : bf16
    %136 = vector.broadcast %cst_64 : bf16 to vector<16x1xbf16>
    %c0_65 = arith.constant 0 : index
    %c35 = arith.constant 35 : index
    %137 = vector.load %arg18[%c0_65, %c35] : memref<16x128xbf16, #tpu.memory_space<vmem>>, vector<16x1xbf16>
    tpu.vector_store %arg18[%c0_65, %c35], %136 {strides = array<i32>} : memref<16x128xbf16, #tpu.memory_space<vmem>>, vector<16x1xbf16>,
    %cst_66 = arith.constant 0.000000e+00 : bf16
    %138 = vector.broadcast %cst_66 : bf16 to vector<16x92xbf16>
    %c0_67 = arith.constant 0 : index
    %c36 = arith.constant 36 : index
    %139 = vector.load %arg18[%c0_67, %c36] : memref<16x128xbf16, #tpu.memory_space<vmem>>, vector<16x92xbf16>
    tpu.vector_store %arg18[%c0_67, %c36], %138 {strides = array<i32>} : memref<16x128xbf16, #tpu.memory_space<vmem>>, vector<16x92xbf16>,
    return
  }
  func.func @transform_0(%arg0: i32) -> (i32, i32) {
    %c0_i32 = arith.constant 0 : i32
    %c0_i32_0 = arith.constant 0 : i32
    return %arg0, %c0_i32 : i32, i32
  }
  func.func @transform_1(%arg0: i32) -> (i32, i32) {
    %c0_i32 = arith.constant 0 : i32
    %c0_i32_0 = arith.constant 0 : i32
    return %arg0, %c0_i32 : i32, i32
  }
  func.func @transform_2(%arg0: i32) -> (i32, i32) {
    %c0_i32 = arith.constant 0 : i32
    %c0_i32_0 = arith.constant 0 : i32
    %c0_i32_1 = arith.constant 0 : i32
    return %c0_i32, %c0_i32_0 : i32, i32
  }
  func.func @transform_3(%arg0: i32) -> (i32, i32) {
    %c0_i32 = arith.constant 0 : i32
    %c0_i32_0 = arith.constant 0 : i32
    %c0_i32_1 = arith.constant 0 : i32
    return %c0_i32, %c0_i32_0 : i32, i32
  }
  func.func @transform_4(%arg0: i32) -> (i32, i32) {
    %c0_i32 = arith.constant 0 : i32
    %c0_i32_0 = arith.constant 0 : i32
    %c0_i32_1 = arith.constant 0 : i32
    return %c0_i32, %c0_i32_0 : i32, i32
  }
  func.func @transform_5(%arg0: i32) -> (i32, i32) {
    %c0_i32 = arith.constant 0 : i32
    %c0_i32_0 = arith.constant 0 : i32
    %c0_i32_1 = arith.constant 0 : i32
    return %c0_i32, %c0_i32_0 : i32, i32
  }
  func.func @transform_6(%arg0: i32) -> (i32, i32) {
    %c0_i32 = arith.constant 0 : i32
    %c0_i32_0 = arith.constant 0 : i32
    %c0_i32_1 = arith.constant 0 : i32
    return %c0_i32, %c0_i32_0 : i32, i32
  }
  func.func @transform_7(%arg0: i32) -> (i32, i32) {
    %c0_i32 = arith.constant 0 : i32
    %c0_i32_0 = arith.constant 0 : i32
    %c0_i32_1 = arith.constant 0 : i32
    return %c0_i32, %c0_i32_0 : i32, i32
  }
  func.func @transform_8(%arg0: i32) -> (i32, i32) {
    %c0_i32 = arith.constant 0 : i32
    %c0_i32_0 = arith.constant 0 : i32
    %c0_i32_1 = arith.constant 0 : i32
    return %c0_i32, %c0_i32_0 : i32, i32
  }
  func.func @transform_9(%arg0: i32) -> (i32, i32) {
    %c0_i32 = arith.constant 0 : i32
    %c0_i32_0 = arith.constant 0 : i32
    %c0_i32_1 = arith.constant 0 : i32
    return %c0_i32, %c0_i32_0 : i32, i32
  }
  func.func @transform_10(%arg0: i32) -> (i32, i32) {
    %c0_i32 = arith.constant 0 : i32
    %c0_i32_0 = arith.constant 0 : i32
    %c0_i32_1 = arith.constant 0 : i32
    return %c0_i32, %c0_i32_0 : i32, i32
  }
  func.func @transform_11(%arg0: i32) -> (i32, i32) {
    %c0_i32 = arith.constant 0 : i32
    %c0_i32_0 = arith.constant 0 : i32
    %c0_i32_1 = arith.constant 0 : i32
    return %c0_i32, %c0_i32_0 : i32, i32
  }
  func.func @transform_12(%arg0: i32) -> (i32, i32) {
    %c0_i32 = arith.constant 0 : i32
    %c0_i32_0 = arith.constant 0 : i32
    %c0_i32_1 = arith.constant 0 : i32
    return %c0_i32, %c0_i32_0 : i32, i32
  }
  func.func @transform_13(%arg0: i32) -> (i32, i32) {
    %c0_i32 = arith.constant 0 : i32
    %c0_i32_0 = arith.constant 0 : i32
    %c0_i32_1 = arith.constant 0 : i32
    return %c0_i32, %c0_i32_0 : i32, i32
  }
  func.func @transform_14(%arg0: i32) -> (i32, i32) {
    %c0_i32 = arith.constant 0 : i32
    %c0_i32_0 = arith.constant 0 : i32
    %c0_i32_1 = arith.constant 0 : i32
    return %c0_i32, %c0_i32_0 : i32, i32
  }
  func.func @transform_15(%arg0: i32) -> (i32, i32) {
    %c0_i32 = arith.constant 0 : i32
    %c0_i32_0 = arith.constant 0 : i32
    %c0_i32_1 = arith.constant 0 : i32
    return %c0_i32, %c0_i32_0 : i32, i32
  }
  func.func @transform_16(%arg0: i32) -> (i32, i32) {
    %c0_i32 = arith.constant 0 : i32
    %c0_i32_0 = arith.constant 0 : i32
    %c0_i32_1 = arith.constant 0 : i32
    return %c0_i32, %c0_i32_0 : i32, i32
  }
  func.func @transform_17(%arg0: i32) -> (i32, i32) {
    %c0_i32 = arith.constant 0 : i32
    %c0_i32_0 = arith.constant 0 : i32
    return %arg0, %c0_i32 : i32, i32
  }
}

module attributes {stable_mosaic.version = 11 : i64} {
  func.func @node_kernel(%arg0: i32, %arg1: memref<16x1xi32, #tpu.memory_space<vmem>>, %arg2: memref<16x128xbf16, #tpu.memory_space<vmem>>, %arg3: memref<8x32xf32, #tpu.memory_space<vmem>>, %arg4: memref<8x3xf32, #tpu.memory_space<vmem>>, %arg5: memref<1x32xf32, #tpu.memory_space<vmem>>, %arg6: memref<1x32xf32, #tpu.memory_space<vmem>>, %arg7: memref<32x32xf32, #tpu.memory_space<vmem>>, %arg8: memref<32x32xf32, #tpu.memory_space<vmem>>, %arg9: memref<1x32xf32, #tpu.memory_space<vmem>>, %arg10: memref<32x32xf32, #tpu.memory_space<vmem>>, %arg11: memref<1x32xf32, #tpu.memory_space<vmem>>, %arg12: memref<8x32xf32, #tpu.memory_space<vmem>>, %arg13: memref<8x3xf32, #tpu.memory_space<vmem>>, %arg14: memref<8x128xf32, #tpu.memory_space<vmem>>) attributes {dimension_semantics = [#tpu.dimension_semantics<arbitrary>], iteration_bounds = array<i64: 4>, scalar_prefetch = 0 : i64, scratch_operands = 1 : i64, tpu.core_type = #tpu.core_type<tc>, window_params = [{transform_indices = @transform_0, window_bounds = array<i64: 16, 1>}, {transform_indices = @transform_1, window_bounds = array<i64: 16, 128>}, {pipeline_mode = #tpu.pipeline_mode<synchronous>, transform_indices = @transform_2, window_bounds = array<i64: 8, 32>}, {pipeline_mode = #tpu.pipeline_mode<synchronous>, transform_indices = @transform_3, window_bounds = array<i64: 8, 3>}, {pipeline_mode = #tpu.pipeline_mode<synchronous>, transform_indices = @transform_4, window_bounds = array<i64: 1, 32>}, {pipeline_mode = #tpu.pipeline_mode<synchronous>, transform_indices = @transform_5, window_bounds = array<i64: 1, 32>}, {pipeline_mode = #tpu.pipeline_mode<synchronous>, transform_indices = @transform_6, window_bounds = array<i64: 32, 32>}, {pipeline_mode = #tpu.pipeline_mode<synchronous>, transform_indices = @transform_7, window_bounds = array<i64: 32, 32>}, {pipeline_mode = #tpu.pipeline_mode<synchronous>, transform_indices = @transform_8, window_bounds = array<i64: 1, 32>}, {pipeline_mode = #tpu.pipeline_mode<synchronous>, transform_indices = @transform_9, window_bounds = array<i64: 32, 32>}, {pipeline_mode = #tpu.pipeline_mode<synchronous>, transform_indices = @transform_10, window_bounds = array<i64: 1, 32>}, {pipeline_mode = #tpu.pipeline_mode<synchronous>, transform_indices = @transform_11, window_bounds = array<i64: 8, 32>}, {pipeline_mode = #tpu.pipeline_mode<synchronous>, transform_indices = @transform_12, window_bounds = array<i64: 8, 3>}]} {
    %c0_i32 = arith.constant 0 : i32
    %0 = arith.cmpi eq, %arg0, %c0_i32 : i32
    %1 = arith.extui %0 : i1 to i32
    %c0_i32_0 = arith.constant 0 : i32
    %2 = arith.cmpi ne, %1, %c0_i32_0 : i32
    scf.if %2 {
      %cst_11 = arith.constant 0.000000e+00 : f32
      %19 = vector.broadcast %cst_11 : f32 to vector<8x128xf32>
      %c0_12 = arith.constant 0 : index
      %c0_13 = arith.constant 0 : index
      %20 = vector.load %arg14[%c0_12, %c0_13] : memref<8x128xf32, #tpu.memory_space<vmem>>, vector<8x128xf32>
      tpu.vector_store %arg14[%c0_12, %c0_13], %19 {strides = array<i32>} : memref<8x128xf32, #tpu.memory_space<vmem>>, vector<8x128xf32>,
    } else {
    }
    %3 = tpu.iota {dimensions = array<i32: 1>} : vector<16x8xi32>
    %c0 = arith.constant 0 : index
    %c0_1 = arith.constant 0 : index
    %4 = vector.load %arg1[%c0, %c0_1] : memref<16x1xi32, #tpu.memory_space<vmem>>, vector<16x1xi32>
    %5 = vector.broadcast %4 : vector<16x1xi32> to vector<16x8xi32>
    %6 = arith.cmpi eq, %5, %3 : vector<16x8xi32>
    %cst = arith.constant 1.000000e+00 : f32
    %cst_2 = arith.constant 0.000000e+00 : f32
    %7 = vector.broadcast %cst : f32 to vector<16x8xf32>
    %8 = vector.broadcast %cst_2 : f32 to vector<16x8xf32>
    %9 = arith.select %6, %7, %8 : vector<16x8xi1>, vector<16x8xf32>
    %10 = arith.truncf %9 : vector<16x8xf32> to vector<16x8xbf16>
    %c0_3 = arith.constant 0 : index
    %c0_4 = arith.constant 0 : index
    %11 = vector.load %arg14[%c0_3, %c0_4] : memref<8x128xf32, #tpu.memory_space<vmem>>, vector<8x128xf32>
    %c0_5 = arith.constant 0 : index
    %c0_6 = arith.constant 0 : index
    %12 = vector.load %arg2[%c0_5, %c0_6] : memref<16x128xbf16, #tpu.memory_space<vmem>>, vector<16x128xbf16>
    %cst_7 = arith.constant dense<0.000000e+00> : vector<8x128xf32>
    %13 = tpu.matmul %10, %12, %cst_7 {dimension_numbers = #tpu.dot_dimension_numbers<[0], [0], [1], [1], [0, 1, 1, 1], [], []>} : vector<16x8xbf16>, vector<16x128xbf16>, vector<8x128xf32> -> vector<8x128xf32>
    %14 = arith.addf %11, %13 : vector<8x128xf32>
    %c0_8 = arith.constant 0 : index
    %c0_9 = arith.constant 0 : index
    %15 = vector.load %arg14[%c0_8, %c0_9] : memref<8x128xf32, #tpu.memory_space<vmem>>, vector<8x128xf32>
    tpu.vector_store %arg14[%c0_8, %c0_9], %14 {strides = array<i32>} : memref<8x128xf32, #tpu.memory_space<vmem>>, vector<8x128xf32>,
    %c3_i32 = arith.constant 3 : i32
    %16 = arith.cmpi eq, %arg0, %c3_i32 : i32
    %17 = arith.extui %16 : i1 to i32
    %c0_i32_10 = arith.constant 0 : i32
    %18 = arith.cmpi ne, %17, %c0_i32_10 : i32
    scf.if %18 {
      %c0_11 = arith.constant 0 : index
      %c0_12 = arith.constant 0 : index
      %19 = vector.load %arg14[%c0_11, %c0_12] : memref<8x128xf32, #tpu.memory_space<vmem>>, vector<8x128xf32>
      %20 = vector.extract_strided_slice %19 {offsets = [0, 0], sizes = [8, 32], strides = [1, 1]} : vector<8x128xf32> to vector<8x32xf32>
      %21 = vector.extract_strided_slice %19 {offsets = [0, 32], sizes = [8, 3], strides = [1, 1]} : vector<8x128xf32> to vector<8x3xf32>
      %22 = vector.extract_strided_slice %19 {offsets = [0, 35], sizes = [8, 1], strides = [1, 1]} : vector<8x128xf32> to vector<8x1xf32>
      %c0_13 = arith.constant 0 : index
      %c0_14 = arith.constant 0 : index
      %23 = vector.load %arg4[%c0_13, %c0_14] : memref<8x3xf32, #tpu.memory_space<vmem>>, vector<8x3xf32>
      %cst_15 = arith.constant 1.000000e+00 : f32
      %24 = vector.broadcast %cst_15 : f32 to vector<8x1xf32>
      %25 = arith.maximumf %22, %24 : vector<8x1xf32>
      %26 = vector.broadcast %25 : vector<8x1xf32> to vector<8x3xf32>
      %27 = arith.divf %21, %26 : vector<8x3xf32>
      %28 = arith.addf %23, %27 : vector<8x3xf32>
      %c0_16 = arith.constant 0 : index
      %c0_17 = arith.constant 0 : index
      %29 = vector.load %arg13[%c0_16, %c0_17] : memref<8x3xf32, #tpu.memory_space<vmem>>, vector<8x3xf32>
      tpu.vector_store %arg13[%c0_16, %c0_17], %28 {strides = array<i32>} : memref<8x3xf32, #tpu.memory_space<vmem>>, vector<8x3xf32>,
      %c0_18 = arith.constant 0 : index
      %c0_19 = arith.constant 0 : index
      %30 = vector.load %arg3[%c0_18, %c0_19] : memref<8x32xf32, #tpu.memory_space<vmem>>, vector<8x32xf32>
      %c0_20 = arith.constant 0 : index
      %c0_21 = arith.constant 0 : index
      %31 = vector.load %arg5[%c0_20, %c0_21] : memref<1x32xf32, #tpu.memory_space<vmem>>, vector<1x32xf32>
      %c0_22 = arith.constant 0 : index
      %c0_23 = arith.constant 0 : index
      %32 = vector.load %arg6[%c0_22, %c0_23] : memref<1x32xf32, #tpu.memory_space<vmem>>, vector<1x32xf32>
      %cst_24 = arith.constant dense<0.000000e+00> : vector<8xf32>
      %33 = vector.multi_reduction <add>, %30, %cst_24 [1] : vector<8x32xf32> to vector<8xf32>
      %34 = vector.shape_cast %33 : vector<8xf32> to vector<8x1xf32>
      %cst_25 = arith.constant 3.200000e+01 : f32
      %35 = vector.broadcast %cst_25 : f32 to vector<8x1xf32>
      %36 = arith.divf %34, %35 : vector<8x1xf32>
      %37 = vector.broadcast %36 : vector<8x1xf32> to vector<8x32xf32>
      %38 = arith.subf %30, %37 : vector<8x32xf32>
      %39 = arith.mulf %38, %38 : vector<8x32xf32>
      %cst_26 = arith.constant dense<0.000000e+00> : vector<8xf32>
      %40 = vector.multi_reduction <add>, %39, %cst_26 [1] : vector<8x32xf32> to vector<8xf32>
      %41 = vector.shape_cast %40 : vector<8xf32> to vector<8x1xf32>
      %cst_27 = arith.constant 3.200000e+01 : f32
      %42 = vector.broadcast %cst_27 : f32 to vector<8x1xf32>
      %43 = arith.divf %41, %42 : vector<8x1xf32>
      %44 = vector.broadcast %36 : vector<8x1xf32> to vector<8x32xf32>
      %45 = arith.subf %30, %44 : vector<8x32xf32>
      %cst_28 = arith.constant 9.99999974E-6 : f32
      %46 = vector.broadcast %cst_28 : f32 to vector<8x1xf32>
      %47 = arith.addf %43, %46 : vector<8x1xf32>
      %48 = math.rsqrt %47 : vector<8x1xf32>
      %49 = vector.broadcast %48 : vector<8x1xf32> to vector<8x32xf32>
      %50 = arith.mulf %45, %49 : vector<8x32xf32>
      %51 = vector.broadcast %31 : vector<1x32xf32> to vector<8x32xf32>
      %52 = arith.mulf %50, %51 : vector<8x32xf32>
      %53 = vector.broadcast %32 : vector<1x32xf32> to vector<8x32xf32>
      %54 = arith.addf %52, %53 : vector<8x32xf32>
      %55 = arith.truncf %54 : vector<8x32xf32> to vector<8x32xbf16>
      %c0_29 = arith.constant 0 : index
      %c0_30 = arith.constant 0 : index
      %56 = vector.load %arg7[%c0_29, %c0_30] : memref<32x32xf32, #tpu.memory_space<vmem>>, vector<32x32xf32>
      %57 = arith.truncf %56 : vector<32x32xf32> to vector<32x32xbf16>
      %cst_31 = arith.constant dense<0.000000e+00> : vector<8x32xf32>
      %58 = tpu.matmul %55, %57, %cst_31 {dimension_numbers = #tpu.dot_dimension_numbers<[1], [0], [0], [1], [0, 0, 1, 1], [], []>} : vector<8x32xbf16>, vector<32x32xbf16>, vector<8x32xf32> -> vector<8x32xf32>
      %59 = arith.truncf %20 : vector<8x32xf32> to vector<8x32xbf16>
      %c0_32 = arith.constant 0 : index
      %c0_33 = arith.constant 0 : index
      %60 = vector.load %arg8[%c0_32, %c0_33] : memref<32x32xf32, #tpu.memory_space<vmem>>, vector<32x32xf32>
      %61 = arith.truncf %60 : vector<32x32xf32> to vector<32x32xbf16>
      %cst_34 = arith.constant dense<0.000000e+00> : vector<8x32xf32>
      %62 = tpu.matmul %59, %61, %cst_34 {dimension_numbers = #tpu.dot_dimension_numbers<[1], [0], [0], [1], [0, 0, 1, 1], [], []>} : vector<8x32xbf16>, vector<32x32xbf16>, vector<8x32xf32> -> vector<8x32xf32>
      %63 = arith.addf %58, %62 : vector<8x32xf32>
      %c0_35 = arith.constant 0 : index
      %c0_36 = arith.constant 0 : index
      %64 = vector.load %arg9[%c0_35, %c0_36] : memref<1x32xf32, #tpu.memory_space<vmem>>, vector<1x32xf32>
      %65 = vector.broadcast %64 : vector<1x32xf32> to vector<8x32xf32>
      %66 = arith.addf %63, %65 : vector<8x32xf32>
      %67 = arith.negf %66 : vector<8x32xf32>
      %68 = math.exp %67 : vector<8x32xf32>
      %cst_37 = arith.constant 1.000000e+00 : f32
      %69 = vector.broadcast %cst_37 : f32 to vector<8x32xf32>
      %70 = arith.addf %69, %68 : vector<8x32xf32>
      %71 = arith.divf %69, %70 : vector<8x32xf32>
      %72 = arith.mulf %66, %71 : vector<8x32xf32>
      %73 = arith.truncf %72 : vector<8x32xf32> to vector<8x32xbf16>
      %c0_38 = arith.constant 0 : index
      %c0_39 = arith.constant 0 : index
      %74 = vector.load %arg10[%c0_38, %c0_39] : memref<32x32xf32, #tpu.memory_space<vmem>>, vector<32x32xf32>
      %75 = arith.truncf %74 : vector<32x32xf32> to vector<32x32xbf16>
      %cst_40 = arith.constant dense<0.000000e+00> : vector<8x32xf32>
      %76 = tpu.matmul %73, %75, %cst_40 {dimension_numbers = #tpu.dot_dimension_numbers<[1], [0], [0], [1], [0, 0, 1, 1], [], []>} : vector<8x32xbf16>, vector<32x32xbf16>, vector<8x32xf32> -> vector<8x32xf32>
      %c0_41 = arith.constant 0 : index
      %c0_42 = arith.constant 0 : index
      %77 = vector.load %arg11[%c0_41, %c0_42] : memref<1x32xf32, #tpu.memory_space<vmem>>, vector<1x32xf32>
      %78 = vector.broadcast %77 : vector<1x32xf32> to vector<8x32xf32>
      %79 = arith.addf %76, %78 : vector<8x32xf32>
      %c0_43 = arith.constant 0 : index
      %c0_44 = arith.constant 0 : index
      %80 = vector.load %arg3[%c0_43, %c0_44] : memref<8x32xf32, #tpu.memory_space<vmem>>, vector<8x32xf32>
      %81 = arith.addf %80, %79 : vector<8x32xf32>
      %c0_45 = arith.constant 0 : index
      %c0_46 = arith.constant 0 : index
      %82 = vector.load %arg12[%c0_45, %c0_46] : memref<8x32xf32, #tpu.memory_space<vmem>>, vector<8x32xf32>
      tpu.vector_store %arg12[%c0_45, %c0_46], %81 {strides = array<i32>} : memref<8x32xf32, #tpu.memory_space<vmem>>, vector<8x32xf32>,
    } else {
    }
    return
  }
  func.func @transform_0(%arg0: i32) -> (i32, i32) {
    %c0_i32 = arith.constant 0 : i32
    %c0_i32_0 = arith.constant 0 : i32
    return %arg0, %c0_i32 : i32, i32
  }
  func.func @transform_1(%arg0: i32) -> (i32, i32) {
    %c0_i32 = arith.constant 0 : i32
    %c0_i32_0 = arith.constant 0 : i32
    return %arg0, %c0_i32 : i32, i32
  }
  func.func @transform_2(%arg0: i32) -> (i32, i32) {
    %c0_i32 = arith.constant 0 : i32
    %c0_i32_0 = arith.constant 0 : i32
    %c0_i32_1 = arith.constant 0 : i32
    return %c0_i32, %c0_i32_0 : i32, i32
  }
  func.func @transform_3(%arg0: i32) -> (i32, i32) {
    %c0_i32 = arith.constant 0 : i32
    %c0_i32_0 = arith.constant 0 : i32
    %c0_i32_1 = arith.constant 0 : i32
    return %c0_i32, %c0_i32_0 : i32, i32
  }
  func.func @transform_4(%arg0: i32) -> (i32, i32) {
    %c0_i32 = arith.constant 0 : i32
    %c0_i32_0 = arith.constant 0 : i32
    %c0_i32_1 = arith.constant 0 : i32
    return %c0_i32, %c0_i32_0 : i32, i32
  }
  func.func @transform_5(%arg0: i32) -> (i32, i32) {
    %c0_i32 = arith.constant 0 : i32
    %c0_i32_0 = arith.constant 0 : i32
    %c0_i32_1 = arith.constant 0 : i32
    return %c0_i32, %c0_i32_0 : i32, i32
  }
  func.func @transform_6(%arg0: i32) -> (i32, i32) {
    %c0_i32 = arith.constant 0 : i32
    %c0_i32_0 = arith.constant 0 : i32
    %c0_i32_1 = arith.constant 0 : i32
    return %c0_i32, %c0_i32_0 : i32, i32
  }
  func.func @transform_7(%arg0: i32) -> (i32, i32) {
    %c0_i32 = arith.constant 0 : i32
    %c0_i32_0 = arith.constant 0 : i32
    %c0_i32_1 = arith.constant 0 : i32
    return %c0_i32, %c0_i32_0 : i32, i32
  }
  func.func @transform_8(%arg0: i32) -> (i32, i32) {
    %c0_i32 = arith.constant 0 : i32
    %c0_i32_0 = arith.constant 0 : i32
    %c0_i32_1 = arith.constant 0 : i32
    return %c0_i32, %c0_i32_0 : i32, i32
  }
  func.func @transform_9(%arg0: i32) -> (i32, i32) {
    %c0_i32 = arith.constant 0 : i32
    %c0_i32_0 = arith.constant 0 : i32
    %c0_i32_1 = arith.constant 0 : i32
    return %c0_i32, %c0_i32_0 : i32, i32
  }
  func.func @transform_10(%arg0: i32) -> (i32, i32) {
    %c0_i32 = arith.constant 0 : i32
    %c0_i32_0 = arith.constant 0 : i32
    %c0_i32_1 = arith.constant 0 : i32
    return %c0_i32, %c0_i32_0 : i32, i32
  }
  func.func @transform_11(%arg0: i32) -> (i32, i32) {
    %c0_i32 = arith.constant 0 : i32
    %c0_i32_0 = arith.constant 0 : i32
    %c0_i32_1 = arith.constant 0 : i32
    return %c0_i32, %c0_i32_0 : i32, i32
  }
  func.func @transform_12(%arg0: i32) -> (i32, i32) {
    %c0_i32 = arith.constant 0 : i32
    %c0_i32_0 = arith.constant 0 : i32
    %c0_i32_1 = arith.constant 0 : i32
    return %c0_i32, %c0_i32_0 : i32, i32
  }
}

</mosaic_0001>

<bundles_post_ra>
// kernel: e_gcl_forward.3
= control target key start
LH: loop header
LB: loop body
LE: loop exit
PB: predicated region body
PF: predicated region fallthrough
CT: control target
= control target key end

     0   :  { %18 = vsyncpa [#allocation4], 0  ;;  %s1017_s21 = smov 0   ;;  %s1130_s0 = inlined_call_operand.vmem [shape: s32[64,1], index: 0, kind: input, shape index: {}]   ;;  %s1131_s1 = inlined_call_operand.vmem [shape: bf16[64,128], index: 1, kind: input, shape index: {}]   ;;  %s1132_s2 = inlined_call_operand.vmem [shape: f32[8,32], index: 2, kind: input, shape index: {}]   ;;  %s1133_s3 = inlined_call_operand.vmem [shape: f32[8,3], index: 3, kind: input, shape index: {}]   ;;  %s1134_s4 = inlined_call_operand.vmem [shape: f32[1,32], index: 4, kind: input, shape index: {}]   ;;  %s1135_s5 = inlined_call_operand.vmem [shape: f32[1,32], index: 5, kind: input, shape index: {}]   ;;  %s1136_s6 = inlined_call_operand.vmem [shape: f32[32,32], index: 6, kind: input, shape index: {}]   ;;  %s1137_s7 = inlined_call_operand.vmem [shape: f32[32,32], index: 7, kind: input, shape index: {}]   ;;  %s1138_s8 = inlined_call_operand.vmem [shape: f32[1,32], index: 8, kind: input, shape index: {}]   ;;  %s1139_s9 = inlined_call_operand.vmem [shape: f32[32,32], index: 9, kind: input, shape index: {}]   ;;  %s1140_s10 = inlined_call_operand.vmem [shape: f32[1,32], index: 10, kind: input, shape index: {}]   ;;  %s1141_s11 = inlined_call_operand.hbm [shape: f32[8,32], index: 11, kind: output, shape index: {0}]   ;;  %s1142_s12 = inlined_call_operand.vmem [shape: f32[8,3], index: 12, kind: output, shape index: {1}]  }
   0x1 LB: > { %s1023_s22 = sadd.s32 4294967295, %s941_s21   ;;  %p808_p0 = scmp.ge.s32.totalorder %s941_s21, 1  ;;  %s941_s21 = sphi %s1017_s21, %s24_s21  }
   0x2   : > { %p368_p1 = scmp.lt.s32.totalorder %s941_s21, 5 }
   0x4   : > { %p369_p2 = pnand %p808_p0, %p368_p1 }
   0x5   : > { %s809_s23 = sshll.u32 (!%p369_p2), %s1023_s22, 1  ;;  %p813_p4 = scmp.ne.s32.totalorder (!%p369_p2), %s1023_s22, 0 }
   0x6   : > { %372 = sbr.rel (%p369_p2) target bundleno = 973 (0x3cd), region = 64  ;;  %p411_p3 = scmp.lt.s32.totalorder (!%p369_p2), %s809_s23, 7 }
   0xd   : > { %s1144_s23 = smov (!%p411_p3, %s809_s23), 7  ;;  %426 = sbr.rel (%p813_p4) target bundleno = 20 (0x14), region = 68 }
   0xe   : > { %s810_s24 = sshll.u32 %s1144_s23, 3  ;;  %s812_s25 = sshll.u32 %s1144_s23, 2  ;;  %v943_v0 = vmov (!%p813_p4), 0.0  }
   0xf   : > { %s414_s28 = scalar_lea.vmem %s1130_s0, %s810_s24  ;;  %s420_s13 = scalar_lea.vmem %s1131_s1, %s812_s25  ;;  %427 = vst [vmem:[#allocation2] sm:$0xff] (!%p813_p4), %v943_v0 }
  0x14 PF: > { %v430_v1 = vld [vmem:[%s414_s28] sm:$0xff]  ;;  %v944_v2 = vmov 0   ;;  %v431_v3 = vld [vmem:[%s414_s28 + $0x8] sm:$0xff]  ;;  %v945_v4 = vmov 0.0   ;;  %vm946_vm0 = vmmov 0   ;;  %v428_v6 = vlaneseq  ;;  %p816_p5 = scmp.ne.s32.totalorder %s1023_s22, 3 }
  0x15   : > { %893 = vset.pattern.permute.xlu0 %v944_v2  ;;  %840 = vmatprep.subr.bf16.mxu0 %v945_v4  ;;  %v894_v5 = vld [vmem:[%s420_s13] sm:$0xff]   ;;  %vm468_vm3 = vcmask 130048   ;;  %vm538_vm4 = vcmask (!%p816_p5), 261120   ;;  %v576_v28 = vld [vmem:[%s1137_s7 + $0x8] sm:$0xff] (!%p816_p5)  ;;  %v947_v30 = vmov (!%p816_p5), 0.0   ;;  %v577_v34 = vld [vmem:[%s1137_s7 + $0x10] sm:$0xff] (!%p816_p5) }
  0x16   : > { %433 = vperm.xlu0 %893, %v430_v1   ;;  %842 = vmatprep.mubr.msk.bf16.mxu0 %vm946_vm0, %v945_v4  ;;  %v429_v7 = vand.u32 127, %v428_v6  ;;  %v443_v14 = vld [vmem:[#allocation2] sm:$0xff]  ;;  %v569_v32 = vld [vmem:[%s1136_s6 + $0x8] sm:$0xff] (!%p816_p5)  ;;  %v578_v35 = vld [vmem:[%s1137_s7 + $0x18] sm:$0xff] (!%p816_p5)  ;;  %vm948_vm5 = vmmov (!%p816_p5), 0   ;;  %v949_v43 = vmov (!%p816_p5), 35  }
  0x17   : > { %841 = vmatpush3.bf16.msra.mxu0 %v894_v5  ;;  %v1039_v20 = vld [vmem:[%s1132_s2] sm:$0xff] (!%p816_p5)  ;;  %854 = vmatprep.subr.bf16.mxu1 (!%p816_p5), %v947_v30  ;;  %v580_v36 = vpack.c.bf16 (!%p816_p5), %v578_v35, %v577_v34  ;;  %v570_v38 = vld [vmem:[%s1136_s6 + $0x10] sm:$0xff] (!%p816_p5)  ;;  %v571_v39 = vld [vmem:[%s1136_s6 + $0x18] sm:$0xff] (!%p816_p5)  ;;  %s950_s30 = smov (!%p816_p5), 96   ;;  %vm533_vm6 = vcmask (!%p816_p5), 23552  }
  0x18   : > { %v539_v21 = vsel (!%p816_p5), %vm538_vm4, %v1039_v20, 0.0  ;;  %v575_v27 = vld [vmem:[%s1137_s7] sm:$0xff] (!%p816_p5)  ;;  %846 = vmatprep.subr.bf16.mxu0 (!%p816_p5), %v947_v30  ;;  %v573_v41 = vpack.c.bf16 (!%p816_p5), %v571_v39, %v570_v38  ;;  %858 = vmatprep.mubr.msk.bf16.mxu1 (!%p816_p5), %vm948_vm5, %v947_v30  ;;  %v684_v59 = vld [vmem:[%s1139_s9 + $0x8] sm:$0xff] (!%p816_p5)  ;;  %v685_v61 = vld [vmem:[%s1139_s9 + $0x10] sm:$0xff] (!%p816_p5) }
  0x19   : > { %v579_v29 = vpack.c.bf16 (!%p816_p5), %v576_v28, %v575_v27  ;;  %v568_v31 = vld [vmem:[%s1136_s6] sm:$0xff] (!%p816_p5)  ;;  %v686_v62 = vld [vmem:[%s1139_s9 + $0x18] sm:$0xff] (!%p816_p5) }
  0x1a   : > { %436 = vperm.xlu0 %893, %v431_v3   ;;  %v572_v33 = vpack.c.bf16 (!%p816_p5), %v569_v32, %v568_v31  ;;  %v817_v48 = vld [vmem:[%s1134_s4] ss:$0 sm:$0xff] (!%p816_p5)  ;;  %v688_v63 = vpack.c.bf16 (!%p816_p5), %v686_v62, %v685_v61 }
  0x1b   : > { %v818_v50 = vld [vmem:[%s1135_s5] ss:$0 sm:$0xff] (!%p816_p5) }
  0x1c   : > { %855 = vmatpush3.bf16.msra.mxu1 (!%p816_p5), %v572_v33  ;;  %v683_v58 = vld [vmem:[%s1139_s9] sm:$0xff] (!%p816_p5) }
  0x1d   : > { %856 = vmatprep.subr.bf16.mxu1 (!%p816_p5), %v947_v30  ;;  %v687_v60 = vpack.c.bf16 (!%p816_p5), %v684_v59, %v683_v58 }
  0x1e   : > { %896 = vset.pattern.permute.xlu0 (!%p816_p5), %v949_v43 }
  0x20   : > { %857 = vmatpush3.bf16.msra.mxu1 (!%p816_p5), %v573_v41 }
  0x39   : > { %540 = vadd.xlane.f32.xlu0 (!%p816_p5), %v539_v21 }
  0x95   : > { %v434_v8 = vpop.permute.xlu0 %433 }
  0x96   : > { %vm438_vm1 = vcmp.eq.s32.totalorder %v434_v8, %v429_v7 }
  0x97   : > { %v440_v10 = vsel %vm438_vm1, 1.0, %v945_v4 }
  0x99   : > { %v437_v9 = vpop.permute.xlu0 %436 }
  0x9a   : > { %vm439_vm2 = vcmp.eq.s32.totalorder %v437_v9, %v429_v7 }
  0x9b   : > { %v441_v11 = vsel %vm439_vm2, 1.0, %v945_v4  ;;  %v821_v4 = vld [vmem:[%s1138_s8] ss:$0 sm:$0xff] (!%p816_p5) }
  0x9c   : > { %v442_v12 = vpack.c.bf16 %v441_v11, %v440_v10 }
  0x9e   : > { %446 = vxpose.xlu1.c.b16.start.end [1/1] (short) (narrow) %v442_v12, 16 }
  0xa2   : > { %895 = vset.pattern.permute.xlu1 (!%p816_p5), %v949_v43 }
  0xc6   : > { %v541_v22 = vpop.xlane.xlu0 (!%p816_p5), %540 }
  0xc7   : > { %v543_v23 = vmul.f32 (!%p816_p5), 0.03125, %v541_v22 }
  0xc9   : > { %v544_v24 = vsub.f32 (!%p816_p5), %v1039_v20, %v543_v23 }
  0xcb   : > { %v545_v25 = vmul.f32 (!%p816_p5), %v544_v24, %v544_v24 }
  0xcd   : > { %v546_v26 = vsel (!%p816_p5), %vm538_vm4, %v545_v25, 0.0 }
  0xce   : > { %547 = vadd.xlane.f32.xlu0 (!%p816_p5), %v546_v26 }
 0x104   : > { %v454_v13 = vpop.trf.xlu1 }
 0x105   : > { %843 = vmatmul.mubr.msk.bf16.vlgmr.msra.gmra.mrb[0].mxu0 %vm468_vm3, %v454_v13 }
 0x106   : > { %847 = vmatpush3.bf16.msra.mxu0 (!%p816_p5), %v579_v29  ;;  %850 = vmatprep.mubr.msk.bf16.mxu0 (!%p816_p5), %vm948_vm5, %v947_v30 }
 0x107   : > { %848 = vmatprep.subr.bf16.mxu0 (!%p816_p5), %v947_v30 }
 0x10a   : > { %849 = vmatpush3.bf16.msra.mxu0 (!%p816_p5), %v580_v36 }
 0x10b   : > { %862 = vmatprep.subr.bf16.mxu0 (!%p816_p5), %v947_v30 }
 0x15b   : > { %v548_v44 = vpop.xlane.xlu0 (!%p816_p5), %547 }
 0x15c   : > { %v549_v45 = vmul.f32 (!%p816_p5), 0.03125, %v548_v44 }
 0x15e   : > { %v550_v46 = vadd.f32 (!%p816_p5), 1e-05, %v549_v45 }
 0x160   : > { %897 = vrsqrt.f32 (!%p816_p5), %v550_v46 }
 0x16a   : > { %v898_v47 = vpop.eup (!%p816_p5), %897 }
 0x16b   : > { %v552_v49 = vmul.f32 (!%p816_p5), %v898_v47, %v544_v24 }
 0x16d   : > { %v559_v51 = vmul.f32 (!%p816_p5), %v817_v48, %v552_v49 }
 0x16f   : > { %v566_v52 = vadd.f32 (!%p816_p5), %v818_v50, %v559_v51 }
 0x171   : > { %v567_v53 = vpack.c.bf16 (!%p816_p5), %v566_v52, %v566_v52 }
 0x173   : > { %859 = vmatmul.mubr.msk.bf16.vlgmr.msra.gmra.mrb[0].mxu1 (!%p816_p5), %vm538_vm4, %v567_v53 }
 0x1d5   : > { %517 = sbr.rel (%p816_p5) target bundleno = 948 (0x3b4), region = 72 }
 0x1d8   : > { %v506_v15 = vpop.f32.mrb[0].mxu0 }
 0x1d9   : > { %v512_v16 = vadd.f32 %v506_v15, %v443_v14  ;;  %v844_v17 = vpop.f32.mrb[1].mxu0 }
 0x1da   : > { %v509_v18 = vpop.f32.mrb[2].mxu0 }
 0x1db   : > { %513 = vst [vmem:[#allocation2] sm:$0xff] %v512_v16  ;;  %v845_v19 = vpop.f32.mrb[3].mxu0  ;;  %v519_v16 = vld [vmem:[%s1133_s3] sm:$0xff] (!%p816_p5) }
 0x1dc   : > { %v823_v19 = vld [vmem:[%s1140_s10] ss:$0 sm:$0xff] }
 0x1e2   : > { %v518_v37 = vld [vmem:[#allocation2] sm:$0xff] }
 0x1e3   : > { %v574_v40 = vpack.c.bf16 %v518_v37, %v518_v37  ;;  %v520_v42 = vmax.f32 %v518_v37, 1.0 }
 0x1e5   : > { %851 = vmatmul.mubr.msk.bf16.vlgmr.msra.gmra.mrb[0].mxu0 %vm538_vm4, %v574_v40  ;;  %523 = vperm.xlu1 %895, %v520_v42  }
 0x1e6   : > { %866 = vmatprep.mubr.msk.bf16.mxu0 %vm948_vm5, %v947_v30  ;;  %863 = vmatpush3.bf16.msra.mxu0 %v687_v60 }
 0x1e7   : > { %864 = vmatprep.subr.bf16.mxu0 %v947_v30 }
 0x1ea   : > { %865 = vmatpush3.bf16.msra.mxu0 %v688_v63 }
 0x246   : > { %v661_v3 = vpop.f32.mrb[0].mxu1 }
 0x247   : > { %v860_v6 = vpop.f32.mrb[1].mxu1 }
 0x248   : > { %v664_v7 = vpop.f32.mrb[2].mxu1 }
 0x249   : > { %v861_v9 = vpop.f32.mrb[3].mxu1 }
 0x264   : > { %v524_v0 = vpop.permute.xlu1 %523 }
 0x265   : > { %899 = vrcp.f32 %v524_v0 }
 0x26f   : > { %v900_v1 = vpop.eup %899 }
 0x270   : > { %v527_v2 = vmul.f32 %v900_v1, %v518_v37 }
 0x272   : > { %529 = vrot.lane.b32.xlu1 %v527_v2, %s950_s30 }
 0x2b8   : > { %v618_v54 = vpop.f32.mrb[0].mxu0 }
 0x2b9   : > { %v852_v55 = vpop.f32.mrb[1].mxu0  ;;  %v662_v5 = vadd.f32 %v661_v3, %v618_v54 }
 0x2ba   : > { %v621_v56 = vpop.f32.mrb[2].mxu0 }
 0x2bb   : > { %v853_v57 = vpop.f32.mrb[3].mxu0  ;;  %v674_v8 = vadd.f32 %v821_v4, %v662_v5 }
 0x2bd   : > { %v822_v10 = vmul.f32 -1.442695, %v674_v8 }
 0x2bf   : > { %901 = vpow2.f32 %v822_v10 }
 0x2c9   : > { %v902_v11 = vpop.eup %901 }
 0x2ca   : > { %v678_v12 = vadd.f32 1.0, %v902_v11 }
 0x2cc   : > { %903 = vrcp.f32 %v678_v12 }
 0x2d6   : > { %v904_v13 = vpop.eup %903 }
 0x2d7   : > { %v681_v14 = vmul.f32 %v904_v13, %v674_v8 }
 0x2d9   : > { %v682_v15 = vpack.c.bf16 %v681_v14, %v681_v14 }
 0x2db   : > { %867 = vmatmul.mubr.msk.bf16.vlgmr.msra.gmra.mrb[4].mxu0 %vm538_vm4, %v682_v15 }
 0x2e4   : > { %v530_v17 = vpop.permute.xlu1 %529 }
 0x2e5   : > { %v532_v18 = vadd.f32 %v530_v17, %v519_v16 }
 0x2e7   : > { %534 = vst.msk [vmem:[%s1142_s12] sm:$0xff] %vm533_vm6, %v532_v18 }
 0x3ae   : > { %v733_v21 = vpop.f32.mrb[4].mxu0 }
 0x3af   : > { %v734_v22 = vadd.f32 %v823_v19, %v733_v21  ;;  %v868_v23 = vpop.f32.mrb[5].mxu0 }
 0x3b0   : > { %v736_v24 = vpop.f32.mrb[6].mxu0 }
 0x3b1   : > { %v739_v25 = vadd.f32 %v734_v22, %v1039_v20  ;;  %v869_v26 = vpop.f32.mrb[7].mxu0 }
 0x3b3   : > { %740 = vst.msk [vmem:[#allocation3] sm:$0xff] %vm538_vm4, %v739_v25 }
 0x3b4 PF: > { %p874_p6 = scmp.eq.s32.totalorder %s1023_s22, 3  ;;  %s951_s23 = smov [#allocation3]  }
 0x3b5   : > { %s748_s24 = sshll.u32 %s951_s23, 4  ;;  %s749_s24 = int_to_ptr.vmem [resolvable:$true] %s748_s24 }
 0x3b6   : > { %s905_s25 = scalar_lea.vmem %s749_s24, 128  ;;  %p912_p10 = scmp.lt.s32.totalorder %s749_s24, %s749_s24 }
 0x3b7   : > { %p906_p7 = scmp.ne.s32.totalorder %s749_s24, %s905_s25  ;;  %p913_p11 = scmp.lt.s32.totalorder %s905_s25, %s905_s25 }
 0x3b9   : > { %p907_p8 = pnand %p906_p7, %p874_p6  ;;  %p914_p12 = por %p913_p11, %p912_p10 }
 0x3bb   : > { %p908_p9 = pneg %p907_p8 }
 0x3bd   : > { %p915_p13 = pnand %p914_p12, %p908_p9 }
 0x3bf   : > { %918 = shalt.err (!%p915_p13)
}
 0x3c0   : > { %s919_s28 = scalar_lea.hbm %s1141_s11, 128 }
 0x3c1   : > { %p920_p0 = scmp.ne.s32.totalorder %s1141_s11, %s919_s28  ;;  %p925_p3 = scmp.lt.u32.totalorder %s919_s28, %s1141_s11 }
 0x3c3   : > { %p921_p1 = pnand %p920_p0, %p874_p6 }
 0x3c5   : > { %p922_p2 = pneg %p921_p1 }
 0x3c7   : > { %p927_p4 = pnand %p925_p3, %p922_p2 }
 0x3c9   : > { %930 = shalt.err (!%p927_p4)
}
 0x3ca   : > { %871 = dma.vmem_to_hbm [thread:$0]  (%p874_p6), %s749_s24, 128, %s1141_s11, [#allocation4]  }
 0x3cb   : > { %936 = dma.done.wait (%p874_p6), [#allocation4], 128  }
 0x3cc   : > { %938 = vsyncadd (%p874_p6), [#allocation4], 4294967168 }
 0x3cd PF: > { %s24_s21 = sadd.s32 1, %s941_s21  }
 0x3ce   : > { %p21_p5 = scmp.ge.s32.totalorder %s24_s21, 6  }
 0x3d0   :  { %23 = sbr.rel (!%p21_p5) target bundleno = 1 (0x1), region = 110 }
 0x3d7   :  { %767 = vsyncpa [#allocation4], 1 }
 0x3d8   :  { %769 = vsyncpa [#allocation4 + $0x1], 1 }

// kernel: e_gcl_forward.2
= control target key start
LH: loop header
LB: loop body
LE: loop exit
PB: predicated region body
PF: predicated region fallthrough
CT: control target
= control target key end

     0   :  { %s1612_s24 = smov 0   ;;  %s1781_s0 = inlined_call_operand.vmem [shape: s32[64,1], index: 0, kind: input, shape index: {}]   ;;  %s1782_s1 = inlined_call_operand.vmem [shape: s32[64,1], index: 1, kind: input, shape index: {}]   ;;  %s1783_s2 = inlined_call_operand.vmem [shape: f32[8,32], index: 2, kind: input, shape index: {}]   ;;  %s1784_s3 = inlined_call_operand.vmem [shape: f32[8,3], index: 3, kind: input, shape index: {}]   ;;  %s1785_s4 = inlined_call_operand.vmem [shape: f32[1,32], index: 4, kind: input, shape index: {}]   ;;  %s1786_s5 = inlined_call_operand.vmem [shape: f32[1,32], index: 5, kind: input, shape index: {}]   ;;  %s1787_s6 = inlined_call_operand.vmem [shape: f32[32,32], index: 6, kind: input, shape index: {}]   ;;  %s1788_s7 = inlined_call_operand.vmem [shape: f32[32,32], index: 7, kind: input, shape index: {}]   ;;  %s1789_s8 = inlined_call_operand.vmem [shape: f32[1,32], index: 8, kind: input, shape index: {}]   ;;  %s1790_s9 = inlined_call_operand.vmem [shape: f32[1,32], index: 9, kind: input, shape index: {}]   ;;  %s1791_s10 = inlined_call_operand.vmem [shape: f32[32,32], index: 10, kind: input, shape index: {}]   ;;  %s1792_s11 = inlined_call_operand.vmem [shape: f32[1,32], index: 11, kind: input, shape index: {}]   ;;  %s1793_s12 = inlined_call_operand.vmem [shape: f32[1,32], index: 12, kind: input, shape index: {}]   ;;  %s1794_s13 = inlined_call_operand.vmem [shape: f32[1,32], index: 13, kind: input, shape index: {}]   ;;  %s1795_s14 = inlined_call_operand.vmem [shape: f32[32,32], index: 14, kind: input, shape index: {}]   ;;  %s1796_s15 = inlined_call_operand.vmem [shape: f32[1,32], index: 15, kind: input, shape index: {}]   ;;  %s1797_s16 = inlined_call_operand.vmem [shape: f32[1,32], index: 16, kind: input, shape index: {}]   ;;  %s1798_s17 = inlined_call_operand.vmem [shape: bf16[64,128], index: 17, kind: output, shape index: {}]  }
   0x1   :  { %1799 = sst [smem:[#allocation2_spill]] %s1781_s0 }
   0x2   :  { %1800 = sst [smem:[#allocation3_spill]] %s1782_s1 }
   0x3 LB: > { %s1342_s25 = sadd.s32 4294967295, %s1515_s24   ;;  %p1346_p0 = scmp.ge.s32.totalorder %s1515_s24, 1  ;;  %s1515_s24 = sphi %s1612_s24, %s27_s24  }
   0x4   : > { %p499_p1 = scmp.lt.s32.totalorder %s1515_s24, 5 }
   0x6   : > { %p500_p2 = pnand %p1346_p0, %p499_p1 }
   0x7   : > { %v576_v0 = vld [vmem:[%s1783_s2] sm:$0xff] (!%p500_p2)  ;;  %vm579_vm0 = vcmask (!%p500_p2), 261120   ;;  %v610_v8 = vld [vmem:[%s1787_s6 + $0x8] sm:$0xff] (!%p500_p2)  ;;  %v1517_v10 = vmov (!%p500_p2), 0.0   ;;  %v611_v13 = vld [vmem:[%s1787_s6 + $0x10] sm:$0xff] (!%p500_p2)  ;;  %vm1518_vm1 = vmmov (!%p500_p2), 0   ;;  %v704_v36 = vlaneseq (!%p500_p2) }
   0x8   : > { %503 = sbr.rel (%p500_p2) target bundleno = 2023 (0x7e7), region = 88  ;;  %v580_v1 = vsel (!%p500_p2), %vm579_vm0, %v576_v0, 0.0  ;;  %v609_v7 = vld [vmem:[%s1787_s6] sm:$0xff] (!%p500_p2)  ;;  %1410 = vmatprep.subr.bf16.mxu0 (!%p500_p2), %v1517_v10  ;;  %1418 = vmatprep.subr.bf16.mxu1 (!%p500_p2), %v1517_v10  ;;  %v659_v12 = vld [vmem:[%s1788_s7 + $0x8] sm:$0xff] (!%p500_p2)  ;;  %v612_v14 = vld [vmem:[%s1787_s6 + $0x18] sm:$0xff] (!%p500_p2)  ;;  %s1347_s30 = sshll.u32 (!%p500_p2), %s1342_s25, 1 }
   0x9   : > { %581 = vadd.xlane.f32.xlu0 (!%p500_p2), %v580_v1  ;;  %v658_v9 = vld [vmem:[%s1788_s7] sm:$0xff] (!%p500_p2)  ;;  %v613_v11 = vpack.c.bf16 (!%p500_p2), %v610_v8, %v609_v7  ;;  %v660_v16 = vld [vmem:[%s1788_s7 + $0x10] sm:$0xff] (!%p500_p2)  ;;  %v661_v17 = vld [vmem:[%s1788_s7 + $0x18] sm:$0xff] (!%p500_p2)  ;;  %1414 = vmatprep.mubr.msk.bf16.mxu0 (!%p500_p2), %vm1518_vm1, %v1517_v10  ;;  %v614_v18 = vpack.c.bf16 (!%p500_p2), %v612_v14, %v611_v13  ;;  %v1519_v20 = vmov (!%p500_p2), 0   ;;  %p557_p3 = scmp.lt.s32.totalorder (!%p500_p2), %s1347_s30, 7  ;;  %s1801_s20 = sld [smem:[#allocation2_spill]] (!%p500_p2) }
   0xa   : > { %v662_v15 = vpack.c.bf16 (!%p500_p2), %v659_v12, %v658_v9  ;;  %1422 = vmatprep.mubr.msk.bf16.mxu1 (!%p500_p2), %vm1518_vm1, %v1517_v10  ;;  %v663_v19 = vpack.c.bf16 (!%p500_p2), %v661_v17, %v660_v16  ;;  %1477 = vset.pattern.permute.xlu1 (!%p500_p2), %v1519_v20  ;;  %s1802_s26 = sld [smem:[#allocation3_spill]] (!%p500_p2)  ;;  %v1353_v29 = vld [vmem:[%s1785_s4] ss:$0 sm:$0xff] (!%p500_p2)  ;;  %v705_v38 = vand.u32 (!%p500_p2), 127, %v704_v36  ;;  %vm738_vm6 = vcmask (!%p500_p2), 1043456   ;;  %s1520_s25 = smov (!%p500_p2), 32  }
   0xb   : > { %1411 = vmatpush3.bf16.msra.mxu0 (!%p500_p2), %v613_v11  ;;  %1478 = vset.pattern.permute.xlu0 (!%p500_p2), %v1519_v20  ;;  %v1354_v31 = vld [vmem:[%s1786_s5] ss:$0 sm:$0xff] (!%p500_p2)  ;;  %vm734_vm7 = vcmask (!%p500_p2), 64512   ;;  %vm997_vm8 = vcmask (!%p500_p2), 23552   ;;  %vm1250_vm9 = vcmask (!%p500_p2), 257024   ;;  %vm1265_vm10 = vcmask (!%p500_p2), 281856  }
   0xc   : > { %1419 = vmatpush3.bf16.msra.mxu1 (!%p500_p2), %v662_v15  ;;  %1412 = vmatprep.subr.bf16.mxu0 (!%p500_p2), %v1517_v10  ;;  %v830_v53 = vld [vmem:[%s1784_s3] sm:$0xff] (!%p500_p2)  ;;  %vm1268_vm11 = vcmask (!%p500_p2), 290072   ;;  %vm1271_vm12 = vcmask (!%p500_p2), 1043744  }
   0xd   : > { %1420 = vmatprep.subr.bf16.mxu1 (!%p500_p2), %v1517_v10  ;;  %v1039_v17 = vld [vmem:[%s1791_s10] sm:$0xff] (!%p500_p2) }
   0xf   : > { %1413 = vmatpush3.bf16.msra.mxu0 %v614_v18  ;;  %s1804_s30 = smov (!%p557_p3, %s1347_s30), 7  ;;  %v1040_v18 = vld [vmem:[%s1791_s10 + $0x8] sm:$0xff] }
  0x10   : > { %1421 = vmatpush3.bf16.msra.mxu1 %v663_v19  ;;  %1426 = vmatprep.subr.bf16.mxu0 %v1517_v10  ;;  %s1348_s18 = sshll.u32 %s1804_s30, 3  ;;  %v1043_v19 = vpack.c.bf16 %v1040_v18, %v1039_v17  ;;  %v1158_v17 = vld [vmem:[%s1795_s14 + $0x18] sm:$0xff]  ;;  %s1352_s1 = sshll.u32 %s1804_s30, 2 }
  0x11   : > { %1432 = vmatprep.subr.bf16.mxu1 %v1517_v10  ;;  %s560_s21 = scalar_lea.vmem %s1801_s20, %s1348_s18  ;;  %s566_s27 = scalar_lea.vmem %s1802_s26, %s1348_s18 }
  0x12   : > { %v706_v21 = vld [vmem:[%s560_s21] sm:$0xff]  ;;  %v707_v23 = vld [vmem:[%s560_s21 + $0x8] sm:$0xff]  ;;  %s1755_s22 = scalar_lea.vmem %s1798_s17, %s1352_s1 }
  0x13   : > { %709 = vperm.xlu1 %1477, %v706_v21   ;;  %v718_v22 = vld [vmem:[%s566_s27] sm:$0xff]  ;;  %v719_v24 = vld [vmem:[%s566_s27 + $0x8] sm:$0xff]  ;;  %v1041_v21 = vld [vmem:[%s1791_s10 + $0x10] sm:$0xff] }
  0x17   : > { %712 = vperm.xlu1 %1477, %v707_v23  }
  0x1b   : > { %724 = vperm.xlu1 %1477, %v719_v24   ;;  %v1363_v24 = vld [vmem:[%s1789_s8] ss:$0 sm:$0xff] }
  0x92   : > { %v710_v35 = vpop.permute.xlu1 %709 }
  0x93   : > { %vm714_vm2 = vcmp.eq.s32.totalorder %v710_v35, %v705_v38 }
  0x94   : > { %v716_v43 = vsel %vm714_vm2, 1.0, %v1517_v10 }
  0x96   : > { %v582_v2 = vpop.xlane.xlu0 %581  ;;  %v713_v37 = vpop.permute.xlu1 %712 }
  0x97   : > { %v584_v3 = vmul.f32 0.03125, %v582_v2  ;;  %vm715_vm3 = vcmp.eq.s32.totalorder %v713_v37, %v705_v38 }
  0x98   : > { %v717_v48 = vsel %vm715_vm3, 1.0, %v1517_v10 }
  0x99   : > { %v585_v4 = vsub.f32 %v576_v0, %v584_v3  ;;  %v730_v58 = vpack.c.bf16 %v717_v48, %v716_v43 }
  0x9a   : > { %v725_v40 = vpop.permute.xlu1 %724 }
  0x9b   : > { %v586_v5 = vmul.f32 %v585_v4, %v585_v4  ;;  %vm727_vm5 = vcmp.eq.s32.totalorder %v725_v40, %v705_v38 }
  0x9c   : > { %v729_v50 = vsel %vm727_vm5, 1.0, %v1517_v10 }
  0x9d   : > { %v587_v6 = vsel %vm579_vm0, %v586_v5, 0.0 }
  0x9e   : > { %588 = vadd.xlane.f32.xlu0 %v587_v6 }
  0xb4   : > { %721 = vperm.xlu0 %1478, %v718_v22   ;;  %v1042_v22 = vld [vmem:[%s1791_s10 + $0x18] sm:$0xff] }
  0xb5   : > { %v1044_v23 = vpack.c.bf16 %v1042_v22, %v1041_v21 }
 0x12b   : > { %v589_v25 = vpop.xlane.xlu0 %588 }
 0x12c   : > { %v590_v26 = vmul.f32 0.03125, %v589_v25 }
 0x12e   : > { %v591_v27 = vadd.f32 1e-05, %v590_v26 }
 0x130   : > { %1479 = vrsqrt.f32 %v591_v27  ;;  %v1364_v27 = vld [vmem:[%s1790_s9] ss:$0 sm:$0xff] }
 0x133   : > { %v722_v39 = vpop.permute.xlu0 %721 }
 0x134   : > { %vm726_vm4 = vcmp.eq.s32.totalorder %v722_v39, %v705_v38 }
 0x135   : > { %v728_v49 = vsel %vm726_vm4, 1.0, %v1517_v10 }
 0x136   : > { %v732_v59 = vpack.c.bf16 %v729_v50, %v728_v49 }
 0x13a   : > { %v1480_v28 = vpop.eup %1479 }
 0x13b   : > { %v593_v30 = vmul.f32 %v1480_v28, %v585_v4 }
 0x13d   : > { %v600_v32 = vmul.f32 %v1353_v29, %v593_v30 }
 0x13f   : > { %v607_v33 = vadd.f32 %v1354_v31, %v600_v32 }
 0x141   : > { %v608_v34 = vpack.c.bf16 %v607_v33, %v607_v33 }
 0x143   : > { %1415 = vmatmul.mubr.msk.bf16.vlgmr.msra.gmra.mrb[0].mxu0 %vm579_vm0, %v608_v34  ;;  %1423 = vmatmul.mubr.msk.bf16.vlgmr.msra.gmra.mrb[0].mxu1 %vm579_vm0, %v608_v34 }
 0x144   : > { %1428 = vmatprep.mubr.msk.bf16.mxu0 %vm1518_vm1, %v1517_v10  ;;  %1434 = vmatprep.mubr.msk.bf16.mxu1 %vm1518_vm1, %v1517_v10 }
 0x216   : > { %v652_v41 = vpop.f32.mrb[0].mxu0  ;;  %v698_v42 = vpop.f32.mrb[0].mxu1 }
 0x217   : > { %v731_v44 = vpack.c.bf16 %v652_v41, %v652_v41  ;;  %v733_v45 = vpack.c.bf16 %v698_v42, %v698_v42  ;;  %v1416_v46 = vpop.f32.mrb[1].mxu0  ;;  %v1424_v47 = vpop.f32.mrb[1].mxu1 }
 0x218   : > { %v655_v51 = vpop.f32.mrb[2].mxu0  ;;  %v701_v52 = vpop.f32.mrb[2].mxu1 }
 0x219   : > { %v787_v54 = vsel %vm738_vm6, %v731_v44, 0  ;;  %v740_v55 = vsel %vm738_vm6, %v733_v45, 0  ;;  %v1417_v56 = vpop.f32.mrb[3].mxu0  ;;  %v1425_v57 = vpop.f32.mrb[3].mxu1  ;;  %v1367_v45 = vld [vmem:[%s1792_s11] ss:$0 sm:$0xff] }
 0x21a   : > { %1427 = vmatpush3.bf16.msra.mxu0 %v740_v55  ;;  %1433 = vmatpush3.bf16.msra.mxu1 %v787_v54 }
 0x21b   : > { %1438 = vmatprep.subr.mxu0 %v830_v53  ;;  %1443 = vmatprep.subr.mxu1 %v830_v53 }
 0x21d   : > { %1429 = vmatmul.mubr.msk.bf16.vlgmr.msra.gmra.mrb[4].mxu0 %vm734_vm7, %v732_v59  ;;  %1435 = vmatmul.mubr.msk.bf16.vlgmr.msra.gmra.mrb[4].mxu1 %vm734_vm7, %v730_v58 }
 0x21e   : > { %1440 = vmatprep.mubr.msk.f32.mxu0 %vm734_vm7, %v716_v43  ;;  %1445 = vmatprep.mubr.msk.f32.mxu1 %vm734_vm7, %v728_v49 }
 0x21f   : > { %1439 = vmatpush3.msra.mxu0 %v830_v53  ;;  %1444 = vmatpush3.msra.mxu1 %v830_v53 }
 0x220   : > { %1448 = vmatprep.subr.bf16.mxu0 %v1517_v10  ;;  %1456 = vmatprep.subr.bf16.mxu1 %v1517_v10 }
 0x225   : > { %1441 = vmatmul.mubr.msk.f32.vlgmr.msra.gmra.mrb[8].mxu0 %vm734_vm7, %v717_v48  ;;  %1446 = vmatmul.mubr.msk.f32.vlgmr.msra.gmra.mrb[8].mxu1 %vm734_vm7, %v729_v50 }
 0x226   : > { %1452 = vmatprep.mubr.msk.bf16.mxu0 %vm1518_vm1, %v1517_v10  ;;  %1460 = vmatprep.mubr.msk.bf16.mxu1 %vm1518_vm1, %v1517_v10 }
 0x227   : > { %1449 = vmatpush3.bf16.msra.mxu0 %v1043_v19 }
 0x228   : > { %1450 = vmatprep.subr.bf16.mxu0 %v1517_v10 }
 0x22b   : > { %1451 = vmatpush3.bf16.msra.mxu0 %v1044_v23 }
 0x2f0   : > { %v776_v60 = vpop.f32.mrb[4].mxu0  ;;  %v823_v61 = vpop.f32.mrb[4].mxu1 }
 0x2f1   : > { %v824_v62 = vadd.f32 %v823_v61, %v776_v60  ;;  %v1430_v63 = vpop.f32.mrb[5].mxu0  ;;  %v1436_v0 = vpop.f32.mrb[5].mxu1 }
 0x2f2   : > { %v779_v1 = vpop.f32.mrb[6].mxu0  ;;  %v826_v2 = vpop.f32.mrb[6].mxu1 }
 0x2f3   : > { %v827_v3 = vadd.f32 %v826_v2, %v779_v1  ;;  %v1431_v4 = vpop.f32.mrb[7].mxu0  ;;  %v1437_v5 = vpop.f32.mrb[7].mxu1 }
 0x2f8   : > { %v1442_v6 = vpop.f32.mrb[8].mxu0  ;;  %v1447_v7 = vpop.f32.mrb[8].mxu1 }
 0x2f9   : > { %v1697_v8 = vsub.f32 %v1442_v6, %v1447_v7  ;;  %v903_v9 = vpop.f32.mrb[9].mxu0  ;;  %v984_v11 = vpop.f32.mrb[9].mxu1 }
 0x2fa   : > { %v1699_v12 = vsub.f32 %v903_v9, %v984_v11 }
 0x2fb   : > { %v996_v15 = vmul.f32 %v1697_v8, %v1697_v8 }
 0x2fc   : > { %v995_v13 = vmul.f32 %v1699_v12, %v1699_v12 }
 0x2fd   : > { %v1001_v16 = vsel %vm997_vm8, %v996_v15, 0.0 }
 0x2fe   : > { %v998_v14 = vsel %vm997_vm8, %v995_v13, 0.0  ;;  %v1155_v13 = vld [vmem:[%s1795_s14] sm:$0xff] }
 0x2ff   : > { %999 = vadd.xlane.f32.xlu1 %v998_v14  ;;  %v1156_v14 = vld [vmem:[%s1795_s14 + $0x8] sm:$0xff] }
 0x300   : > { %v1159_v15 = vpack.c.bf16 %v1156_v14, %v1155_v13 }
 0x302   : > { %1457 = vmatpush3.bf16.msra.mxu1 %v1159_v15 }
 0x303   : > { %1002 = vadd.xlane.f32.xlu1 %v1001_v16  ;;  %1458 = vmatprep.subr.bf16.mxu1 %v1517_v10  ;;  %v1157_v16 = vld [vmem:[%s1795_s14 + $0x10] sm:$0xff] }
 0x304   : > { %v1160_v18 = vpack.c.bf16 %v1158_v17, %v1157_v16 }
 0x306   : > { %1459 = vmatpush3.bf16.msra.mxu1 %v1160_v18 }
 0x38c   : > { %v1000_v25 = vpop.xlane.xlu1 %999 }
 0x38d   : > { %v1011_v26 = vmul.f32 %v1363_v24, %v1000_v25 }
 0x38f   : > { %v1013_v28 = vadd.f32 %v1011_v26, %v824_v62  ;;  %v1371_v26 = vld [vmem:[%s1793_s12] ss:$0 sm:$0xff] }
 0x390   : > { %v1003_v29 = vpop.xlane.xlu1 %1002 }
 0x391   : > { %v1022_v30 = vadd.f32 %v1364_v27, %v1013_v28  ;;  %v1012_v31 = vmul.f32 %v1363_v24, %v1003_v29  ;;  %v1372_v28 = vld [vmem:[%s1794_s13] ss:$0 sm:$0xff] }
 0x393   : > { %v1365_v32 = vmul.f32 -1.442695, %v1022_v30  ;;  %v1014_v33 = vadd.f32 %v1012_v31, %v827_v3 }
 0x395   : > { %1481 = vpow2.f32 %v1365_v32  ;;  %v1023_v34 = vadd.f32 %v1364_v27, %v1014_v33 }
 0x397   : > { %v1366_v35 = vmul.f32 -1.442695, %v1023_v34 }
 0x399   : > { %1483 = vpow2.f32 %v1366_v35 }
 0x39f   : > { %v1482_v36 = vpop.eup %1481 }
 0x3a0   : > { %v1030_v37 = vadd.f32 1.0, %v1482_v36 }
 0x3a2   : > { %1485 = vrcp.f32 %v1030_v37 }
 0x3a3   : > { %v1484_v38 = vpop.eup %1483 }
 0x3a4   : > { %v1031_v39 = vadd.f32 1.0, %v1484_v38  ;;  %v1373_v38 = vld [vmem:[%s1796_s15] ss:$0 sm:$0xff] }
 0x3a6   : > { %1487 = vrcp.f32 %v1031_v39 }
 0x3ac   : > { %v1486_v40 = vpop.eup %1485 }
 0x3ad   : > { %v1036_v42 = vmul.f32 %v1486_v40, %v1022_v30 }
 0x3b0   : > { %v1488_v41 = vpop.eup %1487 }
 0x3b1   : > { %v1037_v43 = vmul.f32 %v1488_v41, %v1023_v34 }
 0x3b3   : > { %v1038_v44 = vpack.c.bf16 %v1037_v43, %v1036_v42 }
 0x3b5   : > { %1453 = vmatmul.mubr.msk.bf16.vlgmr.msra.gmra.mrb[12].mxu0 %vm579_vm0, %v1038_v44 }
 0x488   : > { %v1089_v46 = vpop.f32.mrb[12].mxu0 }
 0x489   : > { %v1090_v47 = vadd.f32 %v1367_v45, %v1089_v46  ;;  %v1454_v48 = vpop.f32.mrb[13].mxu0 }
 0x48a   : > { %v1092_v49 = vpop.f32.mrb[14].mxu0 }
 0x48b   : > { %v1369_v50 = vmul.f32 -1.442695, %v1090_v47  ;;  %v1093_v51 = vadd.f32 %v1367_v45, %v1092_v49  ;;  %v1455_v52 = vpop.f32.mrb[15].mxu0 }
 0x48c   : > { %v1377_v52 = vld [vmem:[%s1797_s16] ss:$0 sm:$0xff] }
 0x48d   : > { %1489 = vpow2.f32 %v1369_v50  ;;  %v1370_v53 = vmul.f32 -1.442695, %v1093_v51 }
 0x48f   : > { %1491 = vpow2.f32 %v1370_v53 }
 0x497   : > { %v1490_v54 = vpop.eup %1489 }
 0x498   : > { %v1102_v55 = vadd.f32 1.0, %v1490_v54 }
 0x499   : > { %v1492_v56 = vpop.eup %1491 }
 0x49a   : > { %1493 = vrcp.f32 %v1102_v55  ;;  %v1103_v57 = vadd.f32 1.0, %v1492_v56 }
 0x49c   : > { %1495 = vrcp.f32 %v1103_v57 }
 0x4a4   : > { %v1494_v58 = vpop.eup %1493 }
 0x4a5   : > { %v1108_v59 = vmul.f32 %v1494_v58, %v1090_v47 }
 0x4a6   : > { %v1496_v60 = vpop.eup %1495 }
 0x4a7   : > { %v1112_v61 = vsel %vm579_vm0, %v1108_v59, 0.0  ;;  %v1109_v62 = vmul.f32 %v1496_v60, %v1093_v51 }
 0x4a8   : > { %1113 = vadd.xlane.f32.xlu0 %v1112_v61 }
 0x4a9   : > { %v1115_v63 = vsel %vm579_vm0, %v1109_v62, 0.0 }
 0x4aa   : > { %1116 = vadd.xlane.f32.xlu1 %v1115_v63 }
 0x535   : > { %v1114_v0 = vpop.xlane.xlu0 %1113 }
 0x536   : > { %v1118_v1 = vmul.f32 0.03125, %v1114_v0 }
 0x537   : > { %v1117_v2 = vpop.xlane.xlu1 %1116 }
 0x538   : > { %v1120_v3 = vsub.f32 %v1108_v59, %v1118_v1  ;;  %v1119_v4 = vmul.f32 0.03125, %v1117_v2 }
 0x53a   : > { %v1121_v5 = vsub.f32 %v1109_v62, %v1119_v4  ;;  %v1122_v6 = vmul.f32 %v1120_v3, %v1120_v3 }
 0x53c   : > { %v1124_v7 = vsel %vm579_vm0, %v1122_v6, 0.0  ;;  %v1123_v9 = vmul.f32 %v1121_v5, %v1121_v5 }
 0x53d   : > { %1125 = vadd.xlane.f32.xlu1 %v1124_v7 }
 0x53e   : > { %v1127_v11 = vsel %vm579_vm0, %v1123_v9, 0.0 }
 0x541   : > { %1128 = vadd.xlane.f32.xlu1 %v1127_v11 }
 0x5ca   : > { %v1126_v19 = vpop.xlane.xlu1 %1125 }
 0x5cb   : > { %v1130_v21 = vmul.f32 0.03125, %v1126_v19 }
 0x5cd   : > { %v1132_v22 = vadd.f32 1e-05, %v1130_v21 }
 0x5ce   : > { %v1129_v23 = vpop.xlane.xlu1 %1128 }
 0x5cf   : > { %1497 = vrsqrt.f32 %v1132_v22  ;;  %v1131_v24 = vmul.f32 0.03125, %v1129_v23 }
 0x5d1   : > { %v1133_v25 = vadd.f32 1e-05, %v1131_v24 }
 0x5d3   : > { %1499 = vrsqrt.f32 %v1133_v25 }
 0x5d9   : > { %v1498_v10 = vpop.eup %1497 }
 0x5da   : > { %v1136_v27 = vmul.f32 %v1498_v10, %v1120_v3 }
 0x5dc   : > { %v1144_v29 = vmul.f32 %v1371_v26, %v1136_v27 }
 0x5dd   : > { %v1500_v30 = vpop.eup %1499 }
 0x5de   : > { %v1137_v31 = vmul.f32 %v1500_v30, %v1121_v5  ;;  %v1152_v32 = vadd.f32 %v1372_v28, %v1144_v29 }
 0x5e0   : > { %v1145_v33 = vmul.f32 %v1371_v26, %v1137_v31  ;;  %v1384_v34 = vpack.c.bf16 %v1152_v32, %v1152_v32 }
 0x5e2   : > { %v1153_v35 = vadd.f32 %v1372_v28, %v1145_v33  ;;  %1251 = vst.msk [vmem:[%s1755_s22] sm:$0xf] %vm1250_vm9, %v1384_v34 }
 0x5e4   : > { %v1154_v36 = vpack.c.bf16 %v1153_v35, %v1152_v32  ;;  %v1385_v37 = vpack.c.bf16 %v1153_v35, %v1153_v35 }
 0x5e6   : > { %1461 = vmatmul.mubr.msk.bf16.vlgmr.msra.gmra.mrb[12].mxu1 %vm579_vm0, %v1154_v36  ;;  %1252 = vst.msk [vmem:[%s1755_s22 + $0x4] sm:$0xf] %vm1250_vm9, %v1385_v37 }
 0x6b9   : > { %v1205_v39 = vpop.f32.mrb[12].mxu1 }
 0x6ba   : > { %v1206_v40 = vadd.f32 %v1373_v38, %v1205_v39  ;;  %v1462_v41 = vpop.f32.mrb[13].mxu1 }
 0x6bb   : > { %v1208_v42 = vpop.f32.mrb[14].mxu1 }
 0x6bc   : > { %v1375_v43 = vmul.f32 -1.442695, %v1206_v40  ;;  %v1209_v44 = vadd.f32 %v1373_v38, %v1208_v42  ;;  %v1463_v45 = vpop.f32.mrb[15].mxu1 }
 0x6be   : > { %1501 = vpow2.f32 %v1375_v43  ;;  %v1376_v46 = vmul.f32 -1.442695, %v1209_v44 }
 0x6c0   : > { %1503 = vpow2.f32 %v1376_v46 }
 0x6c8   : > { %v1502_v47 = vpop.eup %1501 }
 0x6c9   : > { %v1218_v48 = vadd.f32 1.0, %v1502_v47 }
 0x6ca   : > { %v1504_v49 = vpop.eup %1503 }
 0x6cb   : > { %1505 = vrcp.f32 %v1218_v48  ;;  %v1219_v50 = vadd.f32 1.0, %v1504_v49 }
 0x6cd   : > { %1507 = vrcp.f32 %v1219_v50 }
 0x6d5   : > { %v1506_v51 = vpop.eup %1505 }
 0x6d6   : > { %v1224_v53 = vmul.f32 %v1506_v51, %v1206_v40 }
 0x6d7   : > { %v1508_v54 = vpop.eup %1507 }
 0x6d8   : > { %v1225_v55 = vmul.f32 %v1508_v54, %v1209_v44  ;;  %v1233_v56 = vmul.f32 %v1377_v52, %v1224_v53 }
 0x6da   : > { %v1235_v57 = vsel %vm579_vm0, %v1233_v56, 0.0  ;;  %v1234_v58 = vmul.f32 %v1377_v52, %v1225_v55 }
 0x6db   : > { %1236 = vadd.xlane.f32.xlu1 %v1235_v57 }
 0x6dc   : > { %v1238_v59 = vsel %vm579_vm0, %v1234_v58, 0.0 }
 0x6df   : > { %1239 = vadd.xlane.f32.xlu1 %v1238_v59 }
 0x768   : > { %v1237_v60 = vpop.xlane.xlu1 %1236 }
 0x769   : > { %v1241_v61 = vmul.f32 %v1237_v60, %v1699_v12  ;;  %v1521_v12 = vmov 1065369472  }
 0x76b   : > { %v1386_v62 = vpack.c.bf16 %v1241_v61, %v1241_v61 }
 0x76c   : > { %v1240_v63 = vpop.xlane.xlu1 %1239 }
 0x76d   : > { %v1242_v0 = vmul.f32 %v1240_v63, %v1697_v8  ;;  %1259 = vrot.lane.b32.xlu1 %v1386_v62, %s1520_s25 }
 0x76f   : > { %v1387_v1 = vpack.c.bf16 %v1242_v0, %v1242_v0 }
 0x771   : > { %1261 = vrot.lane.b32.xlu0 %v1387_v1, %s1520_s25 }
 0x7df   : > { %v1260_v2 = vpop.permute.xlu1 %1259 }
 0x7e0   : > { %1266 = vst.msk [vmem:[%s1755_s22] sm:$0xf] %vm1265_vm10, %v1260_v2 }
 0x7e1   : > { %1269 = vst.msk [vmem:[%s1755_s22] sm:$0xf] %vm1268_vm11, %v1521_v12 }
 0x7e2   : > { %1272 = vst.msk [vmem:[%s1755_s22] sm:$0xf] %vm1271_vm12, %v1519_v20 }
 0x7e3   : > { %v1262_v3 = vpop.permute.xlu0 %1261 }
 0x7e4   : > { %1267 = vst.msk [vmem:[%s1755_s22 + $0x4] sm:$0xf] %vm1265_vm10, %v1262_v3 }
 0x7e5   : > { %1270 = vst.msk [vmem:[%s1755_s22 + $0x4] sm:$0xf] %vm1268_vm11, %v1521_v12 }
 0x7e6   : > { %1273 = vst.msk [vmem:[%s1755_s22 + $0x4] sm:$0xf] %vm1271_vm12, %v1519_v20 }
 0x7e7 PF: > { %s27_s24 = sadd.s32 1, %s1515_s24  }
 0x7e8   : > { %p24_p4 = scmp.ge.s32.totalorder %s27_s24, 6  }
 0x7ea   :  { %26 = sbr.rel (!%p24_p4) target bundleno = 3 (0x3), region = 121 }

</bundles_post_ra>
